<compile_context>
chip_gen: v7x
topology: tpu7x:2x2x1
jax: 0.10.0
libtpu: 0.0.40
codegen_flags: <defaults>
</compile_context>

<pallas_src>
import numpy as np
import jax
import jax.numpy as jnp
from jax.experimental import pallas as pl
from jax.experimental.pallas import tpu as pltpu

EPS = 1e-5                      # BatchNorm2d default eps

# Fixed (deterministic, in-script) model configuration matching forward():
#   L00,L01: DW 3x3 (C=4) +BN+ReLU      L02: Conv 1x1 4->8 +BN+ReLU
#   L03: Conv 1x1 8->8 +BN              L04: DW 3x3 (C=8) +BN+ReLU
#   L05: Conv 1x1 8->8 +BN              add, L07: ReLU
#   L08: DW 3x3 (C=8) +BN+ReLU          L09: Conv 1x1 8->8 +BN
#   add, L11: ReLU
#   L12: Conv 3x3 8->8 +BN+ReLU         L13: Conv 1x1 8->8 +BN+ReLU
#   L14: Conv 3x3 8->8 +BN+ReLU         L15: Conv 1x1 8->4 (no BN)
#   Sigmoid, reshape (N, C*H*W), L18: Linear 1024->16
N_BATCH, C_IN, HEIGHT, WIDTH, CLASSES = 2, 4, 16, 16, 16
C_PAD = 8                       # every activation padded to 8 channels / pixel
LANES = WIDTH * C_PAD           # 128  -> activations live as (N*H, W*C) = (32, 128)
ROWS = N_BATCH * HEIGHT         # 32
OUT_PAD_ROWS, OUT_PAD_LANES = 8, 128

assert HEIGHT == 16 and CLASSES == 16   # power-of-2 tricks below rely on this

DW_LAYERS = {"layer_00", "layer_01", "layer_04", "layer_08"}
CONV3_ORDER = ["layer_00", "layer_01", "layer_04", "layer_08", "layer_12", "layer_14"]
CONV1_ORDER = ["layer_02", "layer_03", "layer_05", "layer_09", "layer_13", "layer_15"]
BIAS_ORDER = ["layer_00", "layer_01", "layer_02", "layer_03", "layer_04", "layer_05",
              "layer_08", "layer_09", "layer_12", "layer_13", "layer_14", "layer_15"]


# ------------------------------ Pallas kernel ------------------------------

def _fused_forward_kernel(x_ref, w3_ref, w1_ref, b_ref, wbig_ref, fold_ref,
                          bsum_ref, fcb_ref, out_ref):
    f32 = jnp.float32
    bf16 = jnp.bfloat16

    # Per-sample vertical boundary masks for the +-1 row taps (computed once).
    ry = jax.lax.broadcasted_iota(jnp.int32, (ROWS, LANES), 0)
    ymod = jnp.bitwise_and(ry, HEIGHT - 1)
    mask_m = (ymod != 0).astype(f32)            # row r-1 is inside the same sample
    mask_p = (ymod != HEIGHT - 1).astype(f32)   # row r+1 is inside the same sample

    def conv3(v, li, bi, relu):
        # 3x3 / pad 1 conv (DW or dense) as ONE MXU matmul:
        #   [roll(v,-1)*mask, v, roll(v,+1)*mask] (32,384) @ w3cat[li] (384,128)
        vm = pltpu.roll(v, 1, 0) * mask_m              # rows <- v[r-1]  (dy = -1)
        vp = pltpu.roll(v, ROWS - 1, 0) * mask_p       # rows <- v[r+1]  (dy = +1)
        cat = jnp.concatenate([vm, v, vp], axis=1).astype(bf16)
        acc = jnp.dot(cat, w3_ref[li], preferred_element_type=f32) + b_ref[bi]
        return jnp.maximum(acc, 0.0) if relu else acc

    def conv1(v, li, bi, relu):
        # 1x1 conv: block-diagonal lane matmul (+ bias, ReLU)
        acc = jnp.dot(v.astype(bf16), w1_ref[li], preferred_element_type=f32) + b_ref[bi]
        return jnp.maximum(acc, 0.0) if relu else acc

    a = x_ref[...]                                    # (32, 128) lane-dense input
    a = conv3(a, 0, 0, True)                          # OP_0  L00 DW3x3 +BN+ReLU
    a = conv3(a, 1, 1, True)                          # OP_1  L01 DW3x3 +BN+ReLU
    a = conv1(a, 0, 2, True)                          # OP_2  L02 1x1 4->8 +BN+ReLU
    x03 = conv1(a, 1, 3, False)                       # OP_3  L03 1x1 +BN
    x04 = conv3(x03, 2, 4, True)                      # OP_4  L04 DW3x3 +BN+ReLU
    x05 = conv1(x04, 2, 5, False)                     # OP_5  L05 1x1 +BN
    x07 = jnp.maximum(x03 + x05, 0.0)                 # OP_6 add + OP_7 ReLU (fused)
    x08 = conv3(x07, 3, 6, True)                      # OP_8  L08 DW3x3 +BN+ReLU
    x09 = conv1(x08, 3, 7, False)                     # OP_9  L09 1x1 +BN
    x11 = jnp.maximum(x07 + x09, 0.0)                 # OP_10 add + OP_11 ReLU (fused)
    a = conv3(x11, 4, 8, True)                        # OP_12 Conv3x3 +BN+ReLU
    a = conv1(a, 4, 9, True)                          # OP_13 1x1 +BN+ReLU
    a = conv3(a, 5, 10, True)                         # OP_14 Conv3x3 +BN+ReLU
    a = conv1(a, 5, 11, False)                        # OP_15 1x1 8->4 (no BN)

    # OP_16 sigmoid: exp on EUP, approximate reciprocal on EUP.
    s = pl.reciprocal(1.0 + jnp.exp(-a), approx=True)

    # OP_17 reshape + OP_18 FC as 3 well-shaped matmuls (flatten permutation is
    # folded into wbig at pack time; (row%H == y) selection done on the VPU).
    p = jnp.dot(s.astype(bf16), wbig_ref[...], preferred_element_type=f32)   # (32,256)
    ci = jax.lax.broadcasted_iota(jnp.int32, (ROWS, HEIGHT * CLASSES), 1)
    ri = jax.lax.broadcasted_iota(jnp.int32, (ROWS, HEIGHT * CLASSES), 0)
    sel = (jnp.right_shift(ci, 4) == jnp.bitwise_and(ri, HEIGHT - 1)).astype(f32)
    p = p * sel                                                              # keep y == row%H
    rows = jnp.dot(p, fold_ref[...], preferred_element_type=f32)             # (32,128)
    out = jnp.dot(bsum_ref[...], rows, preferred_element_type=f32)           # (8,128)
    out_ref[...] = out + fcb_ref[...]                                        # lane-dense store


@jax.jit
def fused_forward(x_nchw, packed):
    n = x_nchw.shape[0]
    if n != N_BATCH:
        raise ValueError(f"packed selectors assume batch == {N_BATCH}, got {n}")
    # Cheap one-shot layout prep (NCHW -> lane-dense (N*H, W*C_pad)); everything
    # downstream is a single pallas_call.
    xh = jnp.transpose(x_nchw, (0, 2, 3, 1))                        # NHWC
    xh = jnp.pad(xh, ((0, 0), (0, 0), (0, 0), (0, C_PAD - C_IN)))   # pad channels -> 8
    x_lay = xh.reshape(n * HEIGHT, WIDTH * C_PAD)                   # (32, 128)

    vmem = pl.BlockSpec(memory_space=pltpu.MemorySpace.VMEM)
    res = pl.pallas_call(
        _fused_forward_kernel,
        out_shape=jax.ShapeDtypeStruct((OUT_PAD_ROWS, OUT_PAD_LANES), jnp.float32),
        in_specs=[vmem] * 8,
        out_specs=vmem,
    )(x_lay, packed["w3"], packed["w1"], packed["bias"], packed["wbig"],
      packed["fold"], packed["bsum"], packed["fcb"])
    return res[:n, :CLASSES]


# --------------------------- host-side param packing ---------------------------

def _dw_to_dense(w_dw):
    # (C, 1, kh, kw) depthwise (groups=C, K=1) -> dense OIHW (C, C, kh, kw)
    c = w_dw.shape[0]
    dense = np.zeros((c, c) + w_dw.shape[2:], np.float32)
    dense[np.arange(c), np.arange(c)] = w_dw[:, 0]
    return dense


def _fold_bn(p):
    if "gamma" not in p:                      # conv without BN (bias=False) -> identity
        co = p["w"].shape[0]
        return np.ones((co,), np.float32), np.zeros((co,), np.float32)
    scale = p["gamma"] / np.sqrt(p["var"] + EPS)
    bias = p["beta"] - p["mean"] * scale
    return scale.astype(np.float32), bias.astype(np.float32)


def _conv3_mats(w_dense, scale):
    """Banded lane matrices M(dy) so that 3x3/pad1 conv == sum_dy Ydy(A) @ M(dy)."""
    co_n, ci_n = w_dense.shape[0], w_dense.shape[1]
    wf = w_dense * scale[:, None, None, None]          # fold BN scale into weights
    m = np.zeros((3, LANES, LANES), np.float32)
    for dyi, dy in enumerate((-1, 0, 1)):
        for xo in range(WIDTH):
            for dx in (-1, 0, 1):
                xi = xo + dx
                if 0 <= xi < WIDTH:
                    # M(dy)[xi*C+ci, xo*C+co] = W[co, ci, dy+1, dx+1] * scale[co]
                    m[dyi, xi * C_PAD:xi * C_PAD + ci_n,
                      xo * C_PAD:xo * C_PAD + co_n] = wf[:, :, dy + 1, dx + 1].T
    return m


def _conv1_mat(w, scale):
    co_n, ci_n = w.shape[0], w.shape[1]
    wf = (w[:, :, 0, 0] * scale[:, None]).T            # (ci, co), BN scale folded
    m = np.zeros((LANES, LANES), np.float32)
    for x in range(WIDTH):
        m[x * C_PAD:x * C_PAD + ci_n, x * C_PAD:x * C_PAD + co_n] = wf
    return m


def _bias_lane(bias_c):
    b = np.zeros((C_PAD,), np.float32)
    b[:bias_c.shape[0]] = bias_c
    return np.tile(b, WIDTH)[None, :]                  # (1, 128)


def pack_params(raw):
    npr = {k: {kk: np.asarray(vv, np.float32) for kk, vv in v.items()} for k, v in raw.items()}

    folded, biases = {}, []
    for name in BIAS_ORDER:
        scale, bias = _fold_bn(npr[name])
        folded[name] = scale
        biases.append(_bias_lane(bias))

    # 3x3 convs: K=384 packed weights [M(-1); M(0); M(+1)] per layer.
    w3 = []
    for name in CONV3_ORDER:
        w = npr[name]["w"]
        wd = _dw_to_dense(w) if name in DW_LAYERS else w
        m = _conv3_mats(wd, folded[name])                      # (3, 128, 128)
        w3.append(np.concatenate([m[0], m[1], m[2]], axis=0))  # (384, 128)
    w1 = [_conv1_mat(npr[name]["w"], folded[name]) for name in CONV1_ORDER]

    # FC weight with the PyTorch NCHW flatten (c*H*W + y*W + x) folded in, laid
    # out as one (LANES, HEIGHT*CLASSES) matrix: column y*CLASSES+o holds W[o,:,y,:].
    wt = npr["layer_18"]["w"].reshape(CLASSES, C_IN, HEIGHT, WIDTH)      # [o, c, y, x]
    wfc = np.zeros((HEIGHT, LANES, CLASSES), np.float32)
    wfc.reshape(HEIGHT, WIDTH, C_PAD, CLASSES)[:, :, :C_IN, :] = np.transpose(wt, (2, 3, 1, 0))
    wbig = np.transpose(wfc, (1, 0, 2)).reshape(LANES, HEIGHT * CLASSES)  # (128, 256)

    # Fold (256 -> 128 padded classes) and batch-sum (32 rows -> 8 padded batch).
    fold = np.zeros((HEIGHT * CLASSES, OUT_PAD_LANES), np.float32)
    for y in range(HEIGHT):
        for o in range(CLASSES):
            fold[y * CLASSES + o, o] = 1.0
    bsum = np.zeros((OUT_PAD_ROWS, ROWS), np.float32)
    for nb in range(N_BATCH):
        bsum[nb, nb * HEIGHT:(nb + 1) * HEIGHT] = 1.0

    fcb = np.zeros((1, OUT_PAD_LANES), np.float32)
    fcb[0, :CLASSES] = npr["layer_18"]["b"]

    return {
        "w3": jnp.asarray(np.stack(w3), jnp.bfloat16),    # (6, 384, 128) bf16
        "w1": jnp.asarray(np.stack(w1), jnp.bfloat16),    # (6, 128, 128) bf16
        "bias": jnp.asarray(np.stack(biases)),            # (12, 1, 128) f32
        "wbig": jnp.asarray(wbig, jnp.bfloat16),          # (128, 256) bf16
        "fold": jnp.asarray(fold),                        # (256, 128) f32
        "bsum": jnp.asarray(bsum),                        # (8, 32)   f32
        "fcb": jnp.asarray(fcb),                          # (1, 128)  f32
    }


# ------------------------- raw (PyTorch-like) parameters -------------------------

def make_raw_params(key):
    keys = jax.random.split(key, 16)

    def conv_p(k, cin, cout, ksz, dw=False, bn=True):
        kw_, kb_ = jax.random.split(k)
        if dw:
            w = 0.2 * jax.random.normal(kw_, (cout, 1, ksz, ksz), jnp.float32)
        else:
            w = 0.2 * jax.random.normal(kw_, (cout, cin, ksz, ksz), jnp.float32)
        p = {"w": w}
        if bn:
            k1, k2, k3, k4 = jax.random.split(kb_, 4)
            p["gamma"] = 1.0 + 0.1 * jax.random.normal(k1, (cout,), jnp.float32)
            p["beta"] = 0.1 * jax.random.normal(k2, (cout,), jnp.float32)
            p["mean"] = 0.1 * jax.random.normal(k3, (cout,), jnp.float32)
            p["var"] = 1.0 + 0.5 * jax.random.uniform(k4, (cout,), jnp.float32)
        return p

    raw = {
        "layer_00": conv_p(keys[0], 4, 4, 3, dw=True),
        "layer_01": conv_p(keys[1], 4, 4, 3, dw=True),
        "layer_02": conv_p(keys[2], 4, 8, 1),
        "layer_03": conv_p(keys[3], 8, 8, 1),
        "layer_04": conv_p(keys[4], 8, 8, 3, dw=True),
        "layer_05": conv_p(keys[5], 8, 8, 1),
        "layer_08": conv_p(keys[6], 8, 8, 3, dw=True),
        "layer_09": conv_p(keys[7], 8, 8, 1),
        "layer_12": conv_p(keys[8], 8, 8, 3),
        "layer_13": conv_p(keys[9], 8, 8, 1),
        "layer_14": conv_p(keys[10], 8, 8, 3),
        "layer_15": conv_p(keys[11], 8, 4, 1, bn=False),
        "layer_18": {
            "w": 0.05 * jax.random.normal(keys[12], (CLASSES, C_IN * HEIGHT * WIDTH), jnp.float32),
            "b": 0.05 * jax.random.normal(keys[13], (CLASSES,), jnp.float32),
        },
    }
    return raw, keys[14]


# --------------------------- pure-XLA reference (check) ---------------------------

def reference_forward(x, raw):
    hp = jax.lax.Precision.HIGHEST

    def conv(v, p, pad, groups=1):
        return jax.lax.conv_general_dilated(
            v, p["w"], window_strides=(1, 1), padding=((pad, pad), (pad, pad)),
            dimension_numbers=("NCHW", "OIHW", "NCHW"),
            feature_group_count=groups, precision=hp)

    def bn(v, p):
        return ((v - p["mean"][None, :, None, None])
                / jnp.sqrt(p["var"][None, :, None, None] + EPS)
                * p["gamma"][None, :, None, None] + p["beta"][None, :, None, None])

    def block(v, name, pad, groups=1, use_bn=True, relu=False):
        p = raw[name]
        v = conv(v, p, pad, groups)
        if use_bn:
            v = bn(v, p)
        return jnp.maximum(v, 0.0) if relu else v

    v = block(x, "layer_00", 1, groups=4, relu=True)
    v = block(v, "layer_01", 1, groups=4, relu=True)
    v = block(v, "layer_02", 0, relu=True)
    x03 = block(v, "layer_03", 0)
    x04 = block(x03, "layer_04", 1, groups=8, relu=True)
    x05 = block(x04, "layer_05", 0)
    x07 = jnp.maximum(x03 + x05, 0.0)
    x08 = block(x07, "layer_08", 1, groups=8, relu=True)
    x09 = block(x08, "layer_09", 0)
    x11 = jnp.maximum(x07 + x09, 0.0)
    v = block(x11, "layer_12", 1, relu=True)
    v = block(v, "layer_13", 0, relu=True)
    v = block(v, "layer_14", 1, relu=True)
    v = block(v, "layer_15", 0, use_bn=False)
    v = jax.nn.sigmoid(v)
    v = v.reshape(v.shape[0], -1)                      # NCHW flatten
    fc = raw["layer_18"]
    return jnp.dot(v, fc["w"].T, precision=hp) + fc["b"]


# ------------------------------------ main ------------------------------------

if __name__ == "__main__":
    raw, xkey = make_raw_params(jax.random.PRNGKey(0))
    packed = pack_params(raw)                          # one-time, hoisted out of forward
    x = jax.random.normal(xkey, (N_BATCH, C_IN, HEIGHT, WIDTH), jnp.float32)

    out = jax.block_until_ready(fused_forward(x, packed))
    assert out.shape == (N_BATCH, CLASSES) and out.dtype == jnp.float32
    assert bool(jnp.all(jnp.isfinite(out)))

    ref = jax.block_until_ready(jax.jit(reference_forward)(x, raw))
    max_err = float(jnp.max(jnp.abs(out - ref)))
    assert max_err < 5e-2, f"mismatch vs XLA reference: {max_err}"

    print("KERNEL_OK")
</pallas_src>

<mosaic_0001>
module attributes {stable_mosaic.version = 11 : i64} {
  func.func @_fused_forward_kernel(%arg0: memref<32x128xf32, #tpu.memory_space<vmem>>, %arg1: memref<6x384x128xbf16, #tpu.memory_space<vmem>>, %arg2: memref<6x128x128xbf16, #tpu.memory_space<vmem>>, %arg3: memref<12x1x128xf32, #tpu.memory_space<vmem>>, %arg4: memref<128x256xbf16, #tpu.memory_space<vmem>>, %arg5: memref<256x128xf32, #tpu.memory_space<vmem>>, %arg6: memref<8x32xf32, #tpu.memory_space<vmem>>, %arg7: memref<1x128xf32, #tpu.memory_space<vmem>>, %arg8: memref<8x128xf32, #tpu.memory_space<vmem>>) attributes {dimension_semantics = [], scalar_prefetch = 0 : i64, scratch_operands = 0 : i64, tpu.core_type = #tpu.core_type<tc>} {
    %0 = tpu.iota {dimensions = array<i32: 0>} : vector<32x128xi32>
    %c15_i32 = arith.constant 15 : i32
    %1 = vector.broadcast %c15_i32 : i32 to vector<32x128xi32>
    %2 = arith.andi %0, %1 : vector<32x128xi32>
    %c0_i32 = arith.constant 0 : i32
    %3 = vector.broadcast %c0_i32 : i32 to vector<32x128xi32>
    %4 = arith.cmpi ne, %2, %3 : vector<32x128xi32>
    %5 = arith.extui %4 : vector<32x128xi1> to vector<32x128xi32>
    %6 = arith.sitofp %5 : vector<32x128xi32> to vector<32x128xf32>
    %c15_i32_0 = arith.constant 15 : i32
    %7 = vector.broadcast %c15_i32_0 : i32 to vector<32x128xi32>
    %8 = arith.cmpi ne, %2, %7 : vector<32x128xi32>
    %9 = arith.extui %8 : vector<32x128xi1> to vector<32x128xi32>
    %10 = arith.sitofp %9 : vector<32x128xi32> to vector<32x128xf32>
    %c0 = arith.constant 0 : index
    %c0_1 = arith.constant 0 : index
    %11 = vector.load %arg0[%c0, %c0_1] : memref<32x128xf32, #tpu.memory_space<vmem>>, vector<32x128xf32>
    %c1_i32 = arith.constant 1 : i32
    %12 = tpu.dynamic_rotate %11 by %c1_i32 dim 0 : vector<32x128xf32>, i32 -> vector<32x128xf32>
    %13 = arith.mulf %12, %6 : vector<32x128xf32>
    %c31_i32 = arith.constant 31 : i32
    %14 = tpu.dynamic_rotate %11 by %c31_i32 dim 0 : vector<32x128xf32>, i32 -> vector<32x128xf32>
    %15 = arith.mulf %14, %10 : vector<32x128xf32>
    %16 = tpu.concatenate %13, %11, %15 in 1 : vector<32x128xf32>, vector<32x128xf32>, vector<32x128xf32> -> vector<32x384xf32>
    %17 = arith.truncf %16 : vector<32x384xf32> to vector<32x384xbf16>
    %c0_2 = arith.constant 0 : index
    %c0_3 = arith.constant 0 : index
    %c0_4 = arith.constant 0 : index
    %18 = vector.load %arg1[%c0_2, %c0_3, %c0_4] : memref<6x384x128xbf16, #tpu.memory_space<vmem>>, vector<1x384x128xbf16>
    %19 = vector.shape_cast %18 : vector<1x384x128xbf16> to vector<384x128xbf16>
    %cst = arith.constant dense<0.000000e+00> : vector<32x128xf32>
    %20 = tpu.matmul %17, %19, %cst {dimension_numbers = #tpu.dot_dimension_numbers<[1], [0], [0], [1], [0, 0, 1, 1], [], []>} : vector<32x384xbf16>, vector<384x128xbf16>, vector<32x128xf32> -> vector<32x128xf32>
    %c0_5 = arith.constant 0 : index
    %c0_6 = arith.constant 0 : index
    %c0_7 = arith.constant 0 : index
    %21 = vector.load %arg3[%c0_5, %c0_6, %c0_7] : memref<12x1x128xf32, #tpu.memory_space<vmem>>, vector<1x1x128xf32>
    %22 = vector.shape_cast %21 : vector<1x1x128xf32> to vector<1x128xf32>
    %23 = vector.broadcast %22 : vector<1x128xf32> to vector<32x128xf32>
    %24 = arith.addf %20, %23 : vector<32x128xf32>
    %cst_8 = arith.constant 0.000000e+00 : f32
    %25 = vector.broadcast %cst_8 : f32 to vector<32x128xf32>
    %26 = arith.maximumf %24, %25 : vector<32x128xf32>
    %c1_i32_9 = arith.constant 1 : i32
    %27 = tpu.dynamic_rotate %26 by %c1_i32_9 dim 0 : vector<32x128xf32>, i32 -> vector<32x128xf32>
    %28 = arith.mulf %27, %6 : vector<32x128xf32>
    %c31_i32_10 = arith.constant 31 : i32
    %29 = tpu.dynamic_rotate %26 by %c31_i32_10 dim 0 : vector<32x128xf32>, i32 -> vector<32x128xf32>
    %30 = arith.mulf %29, %10 : vector<32x128xf32>
    %31 = tpu.concatenate %28, %26, %30 in 1 : vector<32x128xf32>, vector<32x128xf32>, vector<32x128xf32> -> vector<32x384xf32>
    %32 = arith.truncf %31 : vector<32x384xf32> to vector<32x384xbf16>
    %c1 = arith.constant 1 : index
    %c0_11 = arith.constant 0 : index
    %c0_12 = arith.constant 0 : index
    %33 = vector.load %arg1[%c1, %c0_11, %c0_12] : memref<6x384x128xbf16, #tpu.memory_space<vmem>>, vector<1x384x128xbf16>
    %34 = vector.shape_cast %33 : vector<1x384x128xbf16> to vector<384x128xbf16>
    %cst_13 = arith.constant dense<0.000000e+00> : vector<32x128xf32>
    %35 = tpu.matmul %32, %34, %cst_13 {dimension_numbers = #tpu.dot_dimension_numbers<[1], [0], [0], [1], [0, 0, 1, 1], [], []>} : vector<32x384xbf16>, vector<384x128xbf16>, vector<32x128xf32> -> vector<32x128xf32>
    %c1_14 = arith.constant 1 : index
    %c0_15 = arith.constant 0 : index
    %c0_16 = arith.constant 0 : index
    %36 = vector.load %arg3[%c1_14, %c0_15, %c0_16] : memref<12x1x128xf32, #tpu.memory_space<vmem>>, vector<1x1x128xf32>
    %37 = vector.shape_cast %36 : vector<1x1x128xf32> to vector<1x128xf32>
    %38 = vector.broadcast %37 : vector<1x128xf32> to vector<32x128xf32>
    %39 = arith.addf %35, %38 : vector<32x128xf32>
    %cst_17 = arith.constant 0.000000e+00 : f32
    %40 = vector.broadcast %cst_17 : f32 to vector<32x128xf32>
    %41 = arith.maximumf %39, %40 : vector<32x128xf32>
    %42 = arith.truncf %41 : vector<32x128xf32> to vector<32x128xbf16>
    %c0_18 = arith.constant 0 : index
    %c0_19 = arith.constant 0 : index
    %c0_20 = arith.constant 0 : index
    %43 = vector.load %arg2[%c0_18, %c0_19, %c0_20] : memref<6x128x128xbf16, #tpu.memory_space<vmem>>, vector<1x128x128xbf16>
    %44 = vector.shape_cast %43 : vector<1x128x128xbf16> to vector<128x128xbf16>
    %cst_21 = arith.constant dense<0.000000e+00> : vector<32x128xf32>
    %45 = tpu.matmul %42, %44, %cst_21 {dimension_numbers = #tpu.dot_dimension_numbers<[1], [0], [0], [1], [0, 0, 1, 1], [], []>} : vector<32x128xbf16>, vector<128x128xbf16>, vector<32x128xf32> -> vector<32x128xf32>
    %c2 = arith.constant 2 : index
    %c0_22 = arith.constant 0 : index
    %c0_23 = arith.constant 0 : index
    %46 = vector.load %arg3[%c2, %c0_22, %c0_23] : memref<12x1x128xf32, #tpu.memory_space<vmem>>, vector<1x1x128xf32>
    %47 = vector.shape_cast %46 : vector<1x1x128xf32> to vector<1x128xf32>
    %48 = vector.broadcast %47 : vector<1x128xf32> to vector<32x128xf32>
    %49 = arith.addf %45, %48 : vector<32x128xf32>
    %cst_24 = arith.constant 0.000000e+00 : f32
    %50 = vector.broadcast %cst_24 : f32 to vector<32x128xf32>
    %51 = arith.maximumf %49, %50 : vector<32x128xf32>
    %52 = arith.truncf %51 : vector<32x128xf32> to vector<32x128xbf16>
    %c1_25 = arith.constant 1 : index
    %c0_26 = arith.constant 0 : index
    %c0_27 = arith.constant 0 : index
    %53 = vector.load %arg2[%c1_25, %c0_26, %c0_27] : memref<6x128x128xbf16, #tpu.memory_space<vmem>>, vector<1x128x128xbf16>
    %54 = vector.shape_cast %53 : vector<1x128x128xbf16> to vector<128x128xbf16>
    %cst_28 = arith.constant dense<0.000000e+00> : vector<32x128xf32>
    %55 = tpu.matmul %52, %54, %cst_28 {dimension_numbers = #tpu.dot_dimension_numbers<[1], [0], [0], [1], [0, 0, 1, 1], [], []>} : vector<32x128xbf16>, vector<128x128xbf16>, vector<32x128xf32> -> vector<32x128xf32>
    %c3 = arith.constant 3 : index
    %c0_29 = arith.constant 0 : index
    %c0_30 = arith.constant 0 : index
    %56 = vector.load %arg3[%c3, %c0_29, %c0_30] : memref<12x1x128xf32, #tpu.memory_space<vmem>>, vector<1x1x128xf32>
    %57 = vector.shape_cast %56 : vector<1x1x128xf32> to vector<1x128xf32>
    %58 = vector.broadcast %57 : vector<1x128xf32> to vector<32x128xf32>
    %59 = arith.addf %55, %58 : vector<32x128xf32>
    %c1_i32_31 = arith.constant 1 : i32
    %60 = tpu.dynamic_rotate %59 by %c1_i32_31 dim 0 : vector<32x128xf32>, i32 -> vector<32x128xf32>
    %61 = arith.mulf %60, %6 : vector<32x128xf32>
    %c31_i32_32 = arith.constant 31 : i32
    %62 = tpu.dynamic_rotate %59 by %c31_i32_32 dim 0 : vector<32x128xf32>, i32 -> vector<32x128xf32>
    %63 = arith.mulf %62, %10 : vector<32x128xf32>
    %64 = tpu.concatenate %61, %59, %63 in 1 : vector<32x128xf32>, vector<32x128xf32>, vector<32x128xf32> -> vector<32x384xf32>
    %65 = arith.truncf %64 : vector<32x384xf32> to vector<32x384xbf16>
    %c2_33 = arith.constant 2 : index
    %c0_34 = arith.constant 0 : index
    %c0_35 = arith.constant 0 : index
    %66 = vector.load %arg1[%c2_33, %c0_34, %c0_35] : memref<6x384x128xbf16, #tpu.memory_space<vmem>>, vector<1x384x128xbf16>
    %67 = vector.shape_cast %66 : vector<1x384x128xbf16> to vector<384x128xbf16>
    %cst_36 = arith.constant dense<0.000000e+00> : vector<32x128xf32>
    %68 = tpu.matmul %65, %67, %cst_36 {dimension_numbers = #tpu.dot_dimension_numbers<[1], [0], [0], [1], [0, 0, 1, 1], [], []>} : vector<32x384xbf16>, vector<384x128xbf16>, vector<32x128xf32> -> vector<32x128xf32>
    %c4 = arith.constant 4 : index
    %c0_37 = arith.constant 0 : index
    %c0_38 = arith.constant 0 : index
    %69 = vector.load %arg3[%c4, %c0_37, %c0_38] : memref<12x1x128xf32, #tpu.memory_space<vmem>>, vector<1x1x128xf32>
    %70 = vector.shape_cast %69 : vector<1x1x128xf32> to vector<1x128xf32>
    %71 = vector.broadcast %70 : vector<1x128xf32> to vector<32x128xf32>
    %72 = arith.addf %68, %71 : vector<32x128xf32>
    %cst_39 = arith.constant 0.000000e+00 : f32
    %73 = vector.broadcast %cst_39 : f32 to vector<32x128xf32>
    %74 = arith.maximumf %72, %73 : vector<32x128xf32>
    %75 = arith.truncf %74 : vector<32x128xf32> to vector<32x128xbf16>
    %c2_40 = arith.constant 2 : index
    %c0_41 = arith.constant 0 : index
    %c0_42 = arith.constant 0 : index
    %76 = vector.load %arg2[%c2_40, %c0_41, %c0_42] : memref<6x128x128xbf16, #tpu.memory_space<vmem>>, vector<1x128x128xbf16>
    %77 = vector.shape_cast %76 : vector<1x128x128xbf16> to vector<128x128xbf16>
    %cst_43 = arith.constant dense<0.000000e+00> : vector<32x128xf32>
    %78 = tpu.matmul %75, %77, %cst_43 {dimension_numbers = #tpu.dot_dimension_numbers<[1], [0], [0], [1], [0, 0, 1, 1], [], []>} : vector<32x128xbf16>, vector<128x128xbf16>, vector<32x128xf32> -> vector<32x128xf32>
    %c5 = arith.constant 5 : index
    %c0_44 = arith.constant 0 : index
    %c0_45 = arith.constant 0 : index
    %79 = vector.load %arg3[%c5, %c0_44, %c0_45] : memref<12x1x128xf32, #tpu.memory_space<vmem>>, vector<1x1x128xf32>
    %80 = vector.shape_cast %79 : vector<1x1x128xf32> to vector<1x128xf32>
    %81 = vector.broadcast %80 : vector<1x128xf32> to vector<32x128xf32>
    %82 = arith.addf %78, %81 : vector<32x128xf32>
    %83 = arith.addf %59, %82 : vector<32x128xf32>
    %cst_46 = arith.constant 0.000000e+00 : f32
    %84 = vector.broadcast %cst_46 : f32 to vector<32x128xf32>
    %85 = arith.maximumf %83, %84 : vector<32x128xf32>
    %c1_i32_47 = arith.constant 1 : i32
    %86 = tpu.dynamic_rotate %85 by %c1_i32_47 dim 0 : vector<32x128xf32>, i32 -> vector<32x128xf32>
    %87 = arith.mulf %86, %6 : vector<32x128xf32>
    %c31_i32_48 = arith.constant 31 : i32
    %88 = tpu.dynamic_rotate %85 by %c31_i32_48 dim 0 : vector<32x128xf32>, i32 -> vector<32x128xf32>
    %89 = arith.mulf %88, %10 : vector<32x128xf32>
    %90 = tpu.concatenate %87, %85, %89 in 1 : vector<32x128xf32>, vector<32x128xf32>, vector<32x128xf32> -> vector<32x384xf32>
    %91 = arith.truncf %90 : vector<32x384xf32> to vector<32x384xbf16>
    %c3_49 = arith.constant 3 : index
    %c0_50 = arith.constant 0 : index
    %c0_51 = arith.constant 0 : index
    %92 = vector.load %arg1[%c3_49, %c0_50, %c0_51] : memref<6x384x128xbf16, #tpu.memory_space<vmem>>, vector<1x384x128xbf16>
    %93 = vector.shape_cast %92 : vector<1x384x128xbf16> to vector<384x128xbf16>
    %cst_52 = arith.constant dense<0.000000e+00> : vector<32x128xf32>
    %94 = tpu.matmul %91, %93, %cst_52 {dimension_numbers = #tpu.dot_dimension_numbers<[1], [0], [0], [1], [0, 0, 1, 1], [], []>} : vector<32x384xbf16>, vector<384x128xbf16>, vector<32x128xf32> -> vector<32x128xf32>
    %c6 = arith.constant 6 : index
    %c0_53 = arith.constant 0 : index
    %c0_54 = arith.constant 0 : index
    %95 = vector.load %arg3[%c6, %c0_53, %c0_54] : memref<12x1x128xf32, #tpu.memory_space<vmem>>, vector<1x1x128xf32>
    %96 = vector.shape_cast %95 : vector<1x1x128xf32> to vector<1x128xf32>
    %97 = vector.broadcast %96 : vector<1x128xf32> to vector<32x128xf32>
    %98 = arith.addf %94, %97 : vector<32x128xf32>
    %cst_55 = arith.constant 0.000000e+00 : f32
    %99 = vector.broadcast %cst_55 : f32 to vector<32x128xf32>
    %100 = arith.maximumf %98, %99 : vector<32x128xf32>
    %101 = arith.truncf %100 : vector<32x128xf32> to vector<32x128xbf16>
    %c3_56 = arith.constant 3 : index
    %c0_57 = arith.constant 0 : index
    %c0_58 = arith.constant 0 : index
    %102 = vector.load %arg2[%c3_56, %c0_57, %c0_58] : memref<6x128x128xbf16, #tpu.memory_space<vmem>>, vector<1x128x128xbf16>
    %103 = vector.shape_cast %102 : vector<1x128x128xbf16> to vector<128x128xbf16>
    %cst_59 = arith.constant dense<0.000000e+00> : vector<32x128xf32>
    %104 = tpu.matmul %101, %103, %cst_59 {dimension_numbers = #tpu.dot_dimension_numbers<[1], [0], [0], [1], [0, 0, 1, 1], [], []>} : vector<32x128xbf16>, vector<128x128xbf16>, vector<32x128xf32> -> vector<32x128xf32>
    %c7 = arith.constant 7 : index
    %c0_60 = arith.constant 0 : index
    %c0_61 = arith.constant 0 : index
    %105 = vector.load %arg3[%c7, %c0_60, %c0_61] : memref<12x1x128xf32, #tpu.memory_space<vmem>>, vector<1x1x128xf32>
    %106 = vector.shape_cast %105 : vector<1x1x128xf32> to vector<1x128xf32>
    %107 = vector.broadcast %106 : vector<1x128xf32> to vector<32x128xf32>
    %108 = arith.addf %104, %107 : vector<32x128xf32>
    %109 = arith.addf %85, %108 : vector<32x128xf32>
    %cst_62 = arith.constant 0.000000e+00 : f32
    %110 = vector.broadcast %cst_62 : f32 to vector<32x128xf32>
    %111 = arith.maximumf %109, %110 : vector<32x128xf32>
    %c1_i32_63 = arith.constant 1 : i32
    %112 = tpu.dynamic_rotate %111 by %c1_i32_63 dim 0 : vector<32x128xf32>, i32 -> vector<32x128xf32>
    %113 = arith.mulf %112, %6 : vector<32x128xf32>
    %c31_i32_64 = arith.constant 31 : i32
    %114 = tpu.dynamic_rotate %111 by %c31_i32_64 dim 0 : vector<32x128xf32>, i32 -> vector<32x128xf32>
    %115 = arith.mulf %114, %10 : vector<32x128xf32>
    %116 = tpu.concatenate %113, %111, %115 in 1 : vector<32x128xf32>, vector<32x128xf32>, vector<32x128xf32> -> vector<32x384xf32>
    %117 = arith.truncf %116 : vector<32x384xf32> to vector<32x384xbf16>
    %c4_65 = arith.constant 4 : index
    %c0_66 = arith.constant 0 : index
    %c0_67 = arith.constant 0 : index
    %118 = vector.load %arg1[%c4_65, %c0_66, %c0_67] : memref<6x384x128xbf16, #tpu.memory_space<vmem>>, vector<1x384x128xbf16>
    %119 = vector.shape_cast %118 : vector<1x384x128xbf16> to vector<384x128xbf16>
    %cst_68 = arith.constant dense<0.000000e+00> : vector<32x128xf32>
    %120 = tpu.matmul %117, %119, %cst_68 {dimension_numbers = #tpu.dot_dimension_numbers<[1], [0], [0], [1], [0, 0, 1, 1], [], []>} : vector<32x384xbf16>, vector<384x128xbf16>, vector<32x128xf32> -> vector<32x128xf32>
    %c8 = arith.constant 8 : index
    %c0_69 = arith.constant 0 : index
    %c0_70 = arith.constant 0 : index
    %121 = vector.load %arg3[%c8, %c0_69, %c0_70] : memref<12x1x128xf32, #tpu.memory_space<vmem>>, vector<1x1x128xf32>
    %122 = vector.shape_cast %121 : vector<1x1x128xf32> to vector<1x128xf32>
    %123 = vector.broadcast %122 : vector<1x128xf32> to vector<32x128xf32>
    %124 = arith.addf %120, %123 : vector<32x128xf32>
    %cst_71 = arith.constant 0.000000e+00 : f32
    %125 = vector.broadcast %cst_71 : f32 to vector<32x128xf32>
    %126 = arith.maximumf %124, %125 : vector<32x128xf32>
    %127 = arith.truncf %126 : vector<32x128xf32> to vector<32x128xbf16>
    %c4_72 = arith.constant 4 : index
    %c0_73 = arith.constant 0 : index
    %c0_74 = arith.constant 0 : index
    %128 = vector.load %arg2[%c4_72, %c0_73, %c0_74] : memref<6x128x128xbf16, #tpu.memory_space<vmem>>, vector<1x128x128xbf16>
    %129 = vector.shape_cast %128 : vector<1x128x128xbf16> to vector<128x128xbf16>
    %cst_75 = arith.constant dense<0.000000e+00> : vector<32x128xf32>
    %130 = tpu.matmul %127, %129, %cst_75 {dimension_numbers = #tpu.dot_dimension_numbers<[1], [0], [0], [1], [0, 0, 1, 1], [], []>} : vector<32x128xbf16>, vector<128x128xbf16>, vector<32x128xf32> -> vector<32x128xf32>
    %c9 = arith.constant 9 : index
    %c0_76 = arith.constant 0 : index
    %c0_77 = arith.constant 0 : index
    %131 = vector.load %arg3[%c9, %c0_76, %c0_77] : memref<12x1x128xf32, #tpu.memory_space<vmem>>, vector<1x1x128xf32>
    %132 = vector.shape_cast %131 : vector<1x1x128xf32> to vector<1x128xf32>
    %133 = vector.broadcast %132 : vector<1x128xf32> to vector<32x128xf32>
    %134 = arith.addf %130, %133 : vector<32x128xf32>
    %cst_78 = arith.constant 0.000000e+00 : f32
    %135 = vector.broadcast %cst_78 : f32 to vector<32x128xf32>
    %136 = arith.maximumf %134, %135 : vector<32x128xf32>
    %c1_i32_79 = arith.constant 1 : i32
    %137 = tpu.dynamic_rotate %136 by %c1_i32_79 dim 0 : vector<32x128xf32>, i32 -> vector<32x128xf32>
    %138 = arith.mulf %137, %6 : vector<32x128xf32>
    %c31_i32_80 = arith.constant 31 : i32
    %139 = tpu.dynamic_rotate %136 by %c31_i32_80 dim 0 : vector<32x128xf32>, i32 -> vector<32x128xf32>
    %140 = arith.mulf %139, %10 : vector<32x128xf32>
    %141 = tpu.concatenate %138, %136, %140 in 1 : vector<32x128xf32>, vector<32x128xf32>, vector<32x128xf32> -> vector<32x384xf32>
    %142 = arith.truncf %141 : vector<32x384xf32> to vector<32x384xbf16>
    %c5_81 = arith.constant 5 : index
    %c0_82 = arith.constant 0 : index
    %c0_83 = arith.constant 0 : index
    %143 = vector.load %arg1[%c5_81, %c0_82, %c0_83] : memref<6x384x128xbf16, #tpu.memory_space<vmem>>, vector<1x384x128xbf16>
    %144 = vector.shape_cast %143 : vector<1x384x128xbf16> to vector<384x128xbf16>
    %cst_84 = arith.constant dense<0.000000e+00> : vector<32x128xf32>
    %145 = tpu.matmul %142, %144, %cst_84 {dimension_numbers = #tpu.dot_dimension_numbers<[1], [0], [0], [1], [0, 0, 1, 1], [], []>} : vector<32x384xbf16>, vector<384x128xbf16>, vector<32x128xf32> -> vector<32x128xf32>
    %c10 = arith.constant 10 : index
    %c0_85 = arith.constant 0 : index
    %c0_86 = arith.constant 0 : index
    %146 = vector.load %arg3[%c10, %c0_85, %c0_86] : memref<12x1x128xf32, #tpu.memory_space<vmem>>, vector<1x1x128xf32>
    %147 = vector.shape_cast %146 : vector<1x1x128xf32> to vector<1x128xf32>
    %148 = vector.broadcast %147 : vector<1x128xf32> to vector<32x128xf32>
    %149 = arith.addf %145, %148 : vector<32x128xf32>
    %cst_87 = arith.constant 0.000000e+00 : f32
    %150 = vector.broadcast %cst_87 : f32 to vector<32x128xf32>
    %151 = arith.maximumf %149, %150 : vector<32x128xf32>
    %152 = arith.truncf %151 : vector<32x128xf32> to vector<32x128xbf16>
    %c5_88 = arith.constant 5 : index
    %c0_89 = arith.constant 0 : index
    %c0_90 = arith.constant 0 : index
    %153 = vector.load %arg2[%c5_88, %c0_89, %c0_90] : memref<6x128x128xbf16, #tpu.memory_space<vmem>>, vector<1x128x128xbf16>
    %154 = vector.shape_cast %153 : vector<1x128x128xbf16> to vector<128x128xbf16>
    %cst_91 = arith.constant dense<0.000000e+00> : vector<32x128xf32>
    %155 = tpu.matmul %152, %154, %cst_91 {dimension_numbers = #tpu.dot_dimension_numbers<[1], [0], [0], [1], [0, 0, 1, 1], [], []>} : vector<32x128xbf16>, vector<128x128xbf16>, vector<32x128xf32> -> vector<32x128xf32>
    %c11 = arith.constant 11 : index
    %c0_92 = arith.constant 0 : index
    %c0_93 = arith.constant 0 : index
    %156 = vector.load %arg3[%c11, %c0_92, %c0_93] : memref<12x1x128xf32, #tpu.memory_space<vmem>>, vector<1x1x128xf32>
    %157 = vector.shape_cast %156 : vector<1x1x128xf32> to vector<1x128xf32>
    %158 = vector.broadcast %157 : vector<1x128xf32> to vector<32x128xf32>
    %159 = arith.addf %155, %158 : vector<32x128xf32>
    %cst_94 = arith.constant 0.000000e+00 : f32
    %160 = vector.broadcast %cst_94 : f32 to vector<32x128xf32>
    %161 = arith.subf %160, %159 : vector<32x128xf32>
    %162 = math.exp %161 : vector<32x128xf32>
    %cst_95 = arith.constant 1.000000e+00 : f32
    %163 = vector.broadcast %cst_95 : f32 to vector<32x128xf32>
    %164 = arith.addf %163, %162 : vector<32x128xf32>
    %165 = tpu.reciprocal %164 {approx = true} : vector<32x128xf32> -> vector<32x128xf32>
    %166 = arith.truncf %165 : vector<32x128xf32> to vector<32x128xbf16>
    %c0_96 = arith.constant 0 : index
    %c0_97 = arith.constant 0 : index
    %167 = vector.load %arg4[%c0_96, %c0_97] : memref<128x256xbf16, #tpu.memory_space<vmem>>, vector<128x256xbf16>
    %cst_98 = arith.constant dense<0.000000e+00> : vector<32x256xf32>
    %168 = tpu.matmul %166, %167, %cst_98 {dimension_numbers = #tpu.dot_dimension_numbers<[1], [0], [0], [1], [0, 0, 1, 1], [], []>} : vector<32x128xbf16>, vector<128x256xbf16>, vector<32x256xf32> -> vector<32x256xf32>
    %169 = tpu.iota {dimensions = array<i32: 1>} : vector<32x256xi32>
    %170 = tpu.iota {dimensions = array<i32: 0>} : vector<32x256xi32>
    %c4_i32 = arith.constant 4 : i32
    %171 = vector.broadcast %c4_i32 : i32 to vector<32x256xi32>
    %172 = arith.shrsi %169, %171 : vector<32x256xi32>
    %c15_i32_99 = arith.constant 15 : i32
    %173 = vector.broadcast %c15_i32_99 : i32 to vector<32x256xi32>
    %174 = arith.andi %170, %173 : vector<32x256xi32>
    %175 = arith.cmpi eq, %172, %174 : vector<32x256xi32>
    %176 = arith.extui %175 : vector<32x256xi1> to vector<32x256xi32>
    %177 = arith.sitofp %176 : vector<32x256xi32> to vector<32x256xf32>
    %178 = arith.mulf %168, %177 : vector<32x256xf32>
    %c0_100 = arith.constant 0 : index
    %c0_101 = arith.constant 0 : index
    %179 = vector.load %arg5[%c0_100, %c0_101] : memref<256x128xf32, #tpu.memory_space<vmem>>, vector<256x128xf32>
    %cst_102 = arith.constant dense<0.000000e+00> : vector<32x128xf32>
    %180 = tpu.matmul %178, %179, %cst_102 {dimension_numbers = #tpu.dot_dimension_numbers<[1], [0], [0], [1], [0, 0, 1, 1], [], []>} : vector<32x256xf32>, vector<256x128xf32>, vector<32x128xf32> -> vector<32x128xf32>
    %c0_103 = arith.constant 0 : index
    %c0_104 = arith.constant 0 : index
    %181 = vector.load %arg6[%c0_103, %c0_104] : memref<8x32xf32, #tpu.memory_space<vmem>>, vector<8x32xf32>
    %cst_105 = arith.constant dense<0.000000e+00> : vector<8x128xf32>
    %182 = tpu.matmul %181, %180, %cst_105 {dimension_numbers = #tpu.dot_dimension_numbers<[1], [0], [0], [1], [0, 0, 1, 1], [], []>} : vector<8x32xf32>, vector<32x128xf32>, vector<8x128xf32> -> vector<8x128xf32>
    %c0_106 = arith.constant 0 : index
    %c0_107 = arith.constant 0 : index
    %183 = vector.load %arg7[%c0_106, %c0_107] : memref<1x128xf32, #tpu.memory_space<vmem>>, vector<1x128xf32>
    %184 = vector.broadcast %183 : vector<1x128xf32> to vector<8x128xf32>
    %185 = arith.addf %182, %184 : vector<8x128xf32>
    %c0_108 = arith.constant 0 : index
    %c0_109 = arith.constant 0 : index
    %186 = vector.load %arg8[%c0_108, %c0_109] : memref<8x128xf32, #tpu.memory_space<vmem>>, vector<8x128xf32>
    tpu.vector_store %arg8[%c0_108, %c0_109], %185 {strides = array<i32>} : memref<8x128xf32, #tpu.memory_space<vmem>>, vector<8x128xf32>,
    return
  }
}

</mosaic_0001>

<bundles_post_ra>
// kernel: fused_forward.1
= control target key start
LH: loop header
LB: loop body
LE: loop exit
PB: predicated region body
PF: predicated region fallthrough
CT: control target
= control target key end

     0   :  { %13 = vsyncpa [#allocation3], 0  ;;  %s5525_s0 = inlined_call_operand.vmem [shape: f32[32,128], index: 0, kind: input, shape index: {}]   ;;  %s5526_s1 = inlined_call_operand.vmem [shape: bf16[6,384,128], index: 1, kind: input, shape index: {}]   ;;  %s5527_s2 = inlined_call_operand.hbm [shape: bf16[6,128,128], index: 2, kind: input, shape index: {}]   ;;  %s5528_s3 = inlined_call_operand.vmem [shape: f32[12,1,128], index: 3, kind: input, shape index: {}]   ;;  %s5529_s4 = inlined_call_operand.hbm [shape: bf16[128,256], index: 4, kind: input, shape index: {}]   ;;  %s5530_s5 = inlined_call_operand.hbm [shape: f32[256,128], index: 5, kind: input, shape index: {}]   ;;  %s5531_s6 = inlined_call_operand.vmem [shape: f32[8,32], index: 6, kind: input, shape index: {}]   ;;  %s5532_s7 = inlined_call_operand.vmem [shape: f32[1,128], index: 7, kind: input, shape index: {}]   ;;  %s5533_s8 = inlined_call_operand.vmem [shape: f32[8,128], index: 8, kind: output, shape index: {}]  }
   0x1   :  { %14 = vsyncpa [#allocation5], 0  ;;  %s4711_s27 = smov [#allocation4]   ;;  %s4641_s9 = scalar_lea.hbm %s5529_s4, 2048 }
   0x2   :  { %s38_s28 = sshll.u32 %s4711_s27, 4  ;;  %p4642_p0 = scmp.ne.s32.totalorder %s5529_s4, %s4641_s9  ;;  %s39_s28 = int_to_ptr.vmem [resolvable:$true] %s38_s28 }
   0x3   :  { %p4645_p1 = scmp.lt.u32.totalorder %s4641_s9, %s5529_s4 }
   0x5   :  { %p4647_p2 = pnand %p4645_p1, %p4642_p0 }
   0x7   :  { %4650 = shalt.err (!%p4647_p2)
}
   0x8   :  { %s4651_s14 = scalar_lea.vmem %s39_s28, 2048  ;;  %p4656_p4 = scmp.lt.s32.totalorder %s39_s28, %s39_s28 }
   0x9   :  { %p4652_p3 = scmp.ne.s32.totalorder %s39_s28, %s4651_s14  ;;  %p4657_p5 = scmp.lt.s32.totalorder %s4651_s14, %s4651_s14 }
   0xb   :  { %p4658_p6 = por %p4657_p5, %p4656_p4 }
   0xd   :  { %p4659_p7 = pnand %p4658_p6, %p4652_p3 }
   0xf   :  { %4662 = shalt.err (!%p4659_p7)
}
  0x10   :  { %s4712_s15 = smov 128   ;;  %s4713_s16 = smov 8  }
  0x11   :  { %44 = dma.hbm_to_vmem [thread:$0]  %s5529_s4, 2048, %s39_s28, [#allocation5], %s4712_s15, %s4712_s15, %s4713_s16  }
  0x12   :  { %s4714_s19 = smov [#allocation2]   ;;  %s4663_s23 = scalar_lea.hbm %s5527_s2, 6144 }
  0x13   :  { %s24_s20 = sshll.u32 %s4714_s19, 4  ;;  %p4664_p8 = scmp.ne.s32.totalorder %s5527_s2, %s4663_s23  ;;  %s25_s20 = int_to_ptr.vmem [resolvable:$true] %s24_s20 }
  0x14   :  { %p4667_p9 = scmp.lt.u32.totalorder %s4663_s23, %s5527_s2 }
  0x16   :  { %p4669_p10 = pnand %p4667_p9, %p4664_p8 }
  0x18   :  { %4672 = shalt.err (!%p4669_p10)
}
  0x19   :  { %s4673_s29 = scalar_lea.vmem %s25_s20, 6144  ;;  %p4678_p12 = scmp.lt.s32.totalorder %s25_s20, %s25_s20 }
  0x1a   :  { %p4674_p11 = scmp.ne.s32.totalorder %s25_s20, %s4673_s29  ;;  %p4679_p13 = scmp.lt.s32.totalorder %s4673_s29, %s4673_s29 }
  0x1c   :  { %p4680_p0 = por %p4679_p13, %p4678_p12 }
  0x1e   :  { %p4681_p1 = pnand %p4680_p0, %p4674_p11 }
  0x20   :  { %4684 = shalt.err (!%p4681_p1)
}
  0x21   :  { %s4715_s4 = smov 64   ;;  %s4716_s28 = smov 4  }
  0x22   :  { %30 = dma.hbm_to_vmem [thread:$0]  %s5527_s2, 6144, %s25_s20, [#allocation3], %s4715_s4, %s4715_s4, %s4716_s28  }
  0x23   :  { %s4717_s10 = smov [#allocation6]   ;;  %s4685_s14 = scalar_lea.hbm %s5530_s5, 4096 }
  0x24   :  { %s50_s11 = sshll.u32 %s4717_s10, 4  ;;  %p4686_p2 = scmp.ne.s32.totalorder %s5530_s5, %s4685_s14  ;;  %s51_s11 = int_to_ptr.vmem [resolvable:$true] %s50_s11 }
  0x25   :  { %p4689_p3 = scmp.lt.u32.totalorder %s4685_s14, %s5530_s5 }
  0x27   :  { %p4691_p4 = pnand %p4689_p3, %p4686_p2 }
  0x29   :  { %4694 = shalt.err (!%p4691_p4)
}
  0x2a   :  { %s4695_s22 = scalar_lea.vmem %s51_s11, 4096  ;;  %p4700_p6 = scmp.lt.s32.totalorder %s51_s11, %s51_s11 }
  0x2b   :  { %p4696_p5 = scmp.ne.s32.totalorder %s51_s11, %s4695_s22  ;;  %p4701_p7 = scmp.lt.s32.totalorder %s4695_s22, %s4695_s22 }
  0x2d   :  { %p4702_p8 = por %p4701_p7, %p4700_p6 }
  0x2f   :  { %p4703_p9 = pnand %p4702_p8, %p4696_p5 }
  0x31   :  { %4706 = shalt.err (!%p4703_p9)
}
  0x32   :  { %56 = dma.hbm_to_vmem [thread:$0]  %s5530_s5, 4096, %s51_s11, [#allocation5], %s4712_s15, %s4712_s15, %s4713_s16  }
  0x33   :  { %4707 = dma.done.wait [#allocation3], 6144  }
  0x34   :  { %4708 = vsyncadd [#allocation3], 4294961152 }
  0x35   :  { %4709 = dma.done.wait [#allocation5], 6144  }
  0x36   :  { %4710 = vsyncadd [#allocation5], 4294961152  ;;  %v4409_v0 = vld [vmem:[%s5526_s1 + $0x40] sm:$0xff]   ;;  %v4411_v2 = vld [vmem:[%s5526_s1 + $0x48] sm:$0xff]   ;;  %v71_v4 = vlaneseq  ;;  %v4718_v33 = vmov 0.0   ;;  %vm4721_vm14 = vmmov 0  }
  0x37   :  { %v4410_v1 = vld [vmem:[%s5526_s1] sm:$0xff]   ;;  %3772 = vmatprep.subr.bf16.mxu0 %v4409_v0  ;;  %v4413_v5 = vld [vmem:[%s5526_s1 + $0x8] sm:$0xff]   ;;  %v4414_v6 = vld [vmem:[%s5526_s1 + $0x50] sm:$0xff]   ;;  %vm3206_vm15 = vcmask 261120  }
  0x38   :  { %3773 = vmatpush3.bf16.msra.mxu0 %v4410_v1  ;;  %v4412_v3 = vld [vmem:[%s5526_s1 + $0x80] sm:$0xff]   ;;  %v4415_v7 = vld [vmem:[%s5526_s1 + $0x88] sm:$0xff]   ;;  %v4416_v8 = vld [vmem:[%s5526_s1 + $0x10] sm:$0xff]   ;;  %v4834_v9 = vshrl.u32 %v71_v4, 7 }
  0x39   :  { %3774 = vmatprep.subr.bf16.mxu0 %v4411_v2  ;;  %4109 = vmatprep.subr.bf16.mxu1 %v4412_v3  ;;  %v4417_v10 = vld [vmem:[%s5526_s1 + $0x58] sm:$0xff]   ;;  %v4418_v11 = vld [vmem:[%s5526_s1 + $0x90] sm:$0xff]   ;;  %v4420_v13 = vld [vmem:[%s5526_s1 + $0x60] sm:$0xff]  }
  0x3a   :  { %4110 = vmatpush3.bf16.msra.mxu1 %v4412_v3  ;;  %v4419_v12 = vld [vmem:[%s5526_s1 + $0x18] sm:$0xff]   ;;  %v73_v14 = vadd.s32 8, %v4834_v9  ;;  %v75_v16 = vadd.s32 24, %v4834_v9  ;;  %v4422_v17 = vld [vmem:[%s5526_s1 + $0x20] sm:$0xff]   ;;  %v4857_v18 = vand.u32 15, %v4834_v9  ;;  %v4423_v21 = vld [vmem:[%s5526_s1 + $0x68] sm:$0xff]  }
  0x3b   :  { %4111 = vmatprep.subr.bf16.mxu1 %v4415_v7  ;;  %v4421_v15 = vld [vmem:[%s5526_s1 + $0x98] sm:$0xff]   ;;  %v4424_v19 = vld [vmem:[%s5526_s1 + $0xa0] sm:$0xff]   ;;  %vm112_vm0 = vcmp.lt.s32.totalorder %v4834_v9, 1  ;;  %v74_v23 = vadd.s32 16, %v4834_v9  ;;  %v4425_v24 = vld [vmem:[%s5526_s1 + $0x28] sm:$0xff]   ;;  %vm125_vm4 = vcmp.lt.s32.totalorder %v4834_v9, 7 }
  0x3c   :  { %3775 = vmatpush3.bf16.msra.mxu0 %v4413_v5  ;;  %v4862_v20 = vand.u32 15, %v73_v14  ;;  %v4867_v22 = vand.u32 15, %v75_v16  ;;  %vm80_vm1 = vcmp.ne.s32.totalorder %v4857_v18, 0  ;;  %v4427_v25 = vld [vmem:[%s5526_s1 + $0xa8] sm:$0xff]   ;;  %v4426_v26 = vld [vmem:[%s5526_s1 + $0x70] sm:$0xff]   ;;  %v4429_v29 = vld [vmem:[%s5526_s1 + $0x78] sm:$0xff]  }
  0x3d   :  { %3776 = vmatprep.subr.bf16.mxu0 %v4414_v6  ;;  %v4428_v27 = vld [vmem:[%s5526_s1 + $0x30] sm:$0xff]   ;;  %v4886_v28 = vand.u32 15, %v74_v23  ;;  %v104_v31 = vld [vmem:[%s5525_s0] sm:$0xff]  ;;  %v105_v32 = vld [vmem:[%s5525_s0 + $0x8] sm:$0xff]  ;;  %v4904_v34 = vsel %vm80_vm1, 1.0, %v4718_v33 }
  0x3e   :  { %4112 = vmatpush3.bf16.msra.mxu1 %v4415_v7  ;;  %vm93_vm2 = vcmp.ne.s32.totalorder %v4862_v20, 15  ;;  %vm95_vm3 = vcmp.ne.s32.totalorder %v4867_v22, 15  ;;  %v4430_v30 = vld [vmem:[%s5526_s1 + $0xb0] sm:$0xff]   ;;  %v107_v35 = vld [vmem:[%s5525_s0 + $0x18] sm:$0xff]  ;;  %v108_v38 = vrot.slane %v104_v31, 7  ;;  %v109_v39 = vrot.slane %v105_v32, 7 }
  0x3f   :  { %4113 = vmatprep.subr.bf16.mxu1 %v4418_v11  ;;  %v4912_v36 = vsel %vm93_vm2, 1.0, %v4718_v33  ;;  %v4915_v37 = vsel %vm95_vm3, 1.0, %v4718_v33  ;;  %v121_v40 = vrot.slane %v104_v31, 1  ;;  %v122_v41 = vrot.slane %v105_v32, 1  ;;  %v106_v44 = vld [vmem:[%s5525_s0 + $0x10] sm:$0xff]  ;;  %v4431_v46 = vld [vmem:[%s5526_s1 + $0x38] sm:$0xff]  }
  0x40   :  { %3777 = vmatpush3.bf16.msra.mxu0 %v4416_v8  ;;  %v135_v42 = vpack.c.bf16 %v105_v32, %v104_v31  ;;  %v111_v43 = vrot.slane %v107_v35, 7  ;;  %v124_v45 = vrot.slane %v107_v35, 1  ;;  %vm82_vm5 = vcmp.ne.s32.totalorder %v4886_v28, 0  ;;  %v4432_v50 = vld [vmem:[%s5526_s1 + $0xb8] sm:$0xff]   ;;  %v4433_v56 = vld [vmem:[%s5526_s1 + $0x100] sm:$0xff]   ;;  %v4436_v3 = vld [vmem:[%s5526_s1 + $0x108] sm:$0xff]  }
  0x41   :  { %3778 = vmatprep.subr.bf16.mxu0 %v4417_v10  ;;  %v123_v47 = vrot.slane %v106_v44, 1  ;;  %v115_v48 = vsel %vm112_vm0, %v108_v38, %v109_v39  ;;  %v110_v52 = vrot.slane %v106_v44, 7  ;;  %v128_v55 = vsel %vm125_vm4, %v121_v40, %v122_v41  ;;  %v4434_v59 = vld [vmem:[%s5526_s1 + $0x140] sm:$0xff]   ;;  %v4437_v6 = vld [vmem:[%s5526_s1 + $0x148] sm:$0xff]   ;;  %v4441_v14 = vld [vmem:[%s5526_s1 + $0xd0] sm:$0xff]  }
  0x42   :  { %4114 = vmatpush3.bf16.msra.mxu1 %v4418_v11  ;;  %v116_v49 = vsel %vm112_vm0, %v111_v43, %v108_v38  ;;  %v129_v51 = vsel %vm125_vm4, %v124_v45, %v121_v40  ;;  %371 = vmatprep.mubr.bf16.mxu0 %v135_v42  ;;  %v4951_v62 = vsel %vm82_vm5, 1.0, %v4718_v33  ;;  %v4435_v63 = vld [vmem:[%s5526_s1 + $0xc0] sm:$0xff]   ;;  %v138_v1 = vpack.c.bf16 %v107_v35, %v106_v44  ;;  %v4438_v11 = vld [vmem:[%s5526_s1 + $0xc8] sm:$0xff]   ;;  %v4443_v16 = vld [vmem:[%s5526_s1 + $0x158] sm:$0xff]  }
  0x43   :  { %4115 = vmatprep.subr.bf16.mxu1 %v4421_v15  ;;  %v117_v53 = vmul.f32 %v4904_v34, %v116_v49  ;;  %v127_v54 = vsel %vm125_vm4, %v122_v41, %v123_v47  ;;  %v133_v58 = vmul.f32 %v4915_v37, %v129_v51  ;;  %v126_v61 = vsel %vm125_vm4, %v123_v47, %v124_v45  ;;  %v4447_v23 = vld [vmem:[%s5526_s1 + $0xe0] sm:$0xff]   ;;  %v4454_v31 = vld [vmem:[%s5526_s1 + $0x138] sm:$0xff]  }
  0x44   :  { %3779 = vmatpush3.bf16.msra.mxu0 %v4419_v12  ;;  %v131_v57 = vmul.f32 %v4912_v36, %v127_v54  ;;  %v114_v2 = vsel %vm112_vm0, %v109_v39, %v110_v52  ;;  %v113_v8 = vsel %vm112_vm0, %v110_v52, %v111_v43  ;;  %v4439_v12 = vld [vmem:[%s5526_s1 + $0x110] sm:$0xff]   ;;  %v4455_v32 = vld [vmem:[%s5526_s1 + $0x178] sm:$0xff]   ;;  %v4457_v38 = vld [vmem:[#allocation2] sm:$0xff]  }
  0x45   :  { %3780 = vmatprep.subr.bf16.mxu0 %v4420_v13  ;;  %v134_v60 = vpack.c.bf16 %v115_v48, %v117_v53  ;;  %v139_v5 = vpack.c.bf16 %v133_v58, %v126_v61  ;;  %v119_v7 = vmul.f32 %v4951_v62, %v114_v2  ;;  %v4440_v13 = vld [vmem:[%s5526_s1 + $0x150] sm:$0xff]   ;;  %v4456_v35 = vld [vmem:[%s5526_s1 + $0xf8] sm:$0xff]   ;;  %v3291_v41 = vld [vmem:[%s5528_s3] ss:$0 sm:$0xff] }
  0x46   :  { %4116 = vmatpush3.bf16.msra.mxu1 %v4421_v15  ;;  %v136_v0 = vpack.c.bf16 %v131_v57, %v128_v55  ;;  %v4442_v15 = vld [vmem:[%s5526_s1 + $0x118] sm:$0xff]  }
  0x47   :  { %4117 = vmatprep.subr.bf16.mxu1 %v4424_v19  ;;  %v137_v10 = vpack.c.bf16 %v113_v8, %v119_v7  ;;  %v4596_v9 = vld [vmem:[#allocation2 + $0x158] sm:$0xff]  }
  0x48   :  { %3781 = vmatpush3.bf16.msra.mxu0 %v4422_v17  ;;  %4125 = vmatprep.mubr.bf16.mxu1 %v136_v0  ;;  %v4444_v17 = vld [vmem:[%s5526_s1 + $0xd8] sm:$0xff]  }
  0x49   :  { %3782 = vmatprep.subr.bf16.mxu0 %v4423_v21  ;;  %v4446_v21 = vld [vmem:[%s5526_s1 + $0x160] sm:$0xff]  }
  0x4a   :  { %4118 = vmatpush3.bf16.msra.mxu1 %v4424_v19  ;;  %v4445_v19 = vld [vmem:[%s5526_s1 + $0x120] sm:$0xff]  }
  0x4b   :  { %4119 = vmatprep.subr.bf16.mxu1 %v4427_v25 }
  0x4c   :  { %3783 = vmatpush3.bf16.msra.mxu0 %v4425_v24  ;;  %v4448_v24 = vld [vmem:[%s5526_s1 + $0x128] sm:$0xff]  }
  0x4d   :  { %3784 = vmatprep.subr.bf16.mxu0 %v4426_v26  ;;  %v4450_v26 = vld [vmem:[%s5526_s1 + $0xe8] sm:$0xff]  }
  0x4e   :  { %4120 = vmatpush3.bf16.msra.mxu1 %v4427_v25  ;;  %v4449_v25 = vld [vmem:[%s5526_s1 + $0x168] sm:$0xff]  }
  0x4f   :  { %4121 = vmatprep.subr.bf16.mxu1 %v4430_v30 }
  0x50   :  { %3785 = vmatpush3.bf16.msra.mxu0 %v4428_v27  ;;  %v4451_v27 = vld [vmem:[%s5526_s1 + $0x130] sm:$0xff]  }
  0x51   :  { %3786 = vmatprep.subr.bf16.mxu0 %v4429_v29  ;;  %v4452_v29 = vld [vmem:[%s5526_s1 + $0x170] sm:$0xff]  }
  0x52   :  { %4122 = vmatpush3.bf16.msra.mxu1 %v4430_v30  ;;  %v4453_v30 = vld [vmem:[%s5526_s1 + $0xf0] sm:$0xff]  }
  0x53   :  { %4123 = vmatprep.subr.bf16.mxu1 %v4432_v50 }
  0x54   :  { %3787 = vmatpush3.bf16.msra.mxu0 %v4431_v46 }
  0x55   :  { %3810 = vmatprep.subr.bf16.mxu0 %v4433_v56 }
  0x56   :  { %4124 = vmatpush3.bf16.msra.mxu1 %v4432_v50 }
  0x57   :  { %372 = vmatmul.mubr.bf16.vlgmr.msra.gmra.mrb[0].mxu0 %v134_v60  ;;  %4129 = vmatprep.subr.bf16.mxu1 %v4434_v59 }
  0x58   :  { %379 = vmatprep.mubr.bf16.mxu0 %v138_v1  ;;  %3811 = vmatpush3.bf16.msra.mxu0 %v4435_v63 }
  0x59   :  { %4126 = vmatmul.mubr.bf16.vlgmr.msra.gmra.mrb[0].mxu1 %v139_v5  ;;  %3812 = vmatprep.subr.bf16.mxu0 %v4436_v3 }
  0x5a   :  { %4130 = vmatpush3.bf16.msra.mxu1 %v4434_v59 }
  0x5b   :  { %4131 = vmatprep.subr.bf16.mxu1 %v4437_v6 }
  0x5c   :  { %3813 = vmatpush3.bf16.msra.mxu0 %v4438_v11 }
  0x5d   :  { %3814 = vmatprep.subr.bf16.mxu0 %v4439_v12 }
  0x5e   :  { %4132 = vmatpush3.bf16.msra.mxu1 %v4437_v6 }
  0x5f   :  { %380 = vmatmul.mubr.bf16.gmra.mrb[4].mxu0 %v137_v10  ;;  %4133 = vmatprep.subr.bf16.mxu1 %v4440_v13 }
  0x60   :  { %3815 = vmatpush3.bf16.msra.mxu0 %v4441_v14 }
  0x61   :  { %3816 = vmatprep.subr.bf16.mxu0 %v4442_v15 }
  0x62   :  { %4134 = vmatpush3.bf16.msra.mxu1 %v4440_v13 }
  0x63   :  { %4135 = vmatprep.subr.bf16.mxu1 %v4443_v16 }
  0x64   :  { %3817 = vmatpush3.bf16.msra.mxu0 %v4444_v17 }
  0x65   :  { %3818 = vmatprep.subr.bf16.mxu0 %v4445_v19 }
  0x66   :  { %4136 = vmatpush3.bf16.msra.mxu1 %v4443_v16 }
  0x67   :  { %4137 = vmatprep.subr.bf16.mxu1 %v4446_v21 }
  0x68   :  { %3819 = vmatpush3.bf16.msra.mxu0 %v4447_v23 }
  0x69   :  { %3820 = vmatprep.subr.bf16.mxu0 %v4448_v24 }
  0x6a   :  { %4138 = vmatpush3.bf16.msra.mxu1 %v4446_v21 }
  0x6b   :  { %4139 = vmatprep.subr.bf16.mxu1 %v4449_v25 }
  0x6c   :  { %3821 = vmatpush3.bf16.msra.mxu0 %v4450_v26 }
  0x6d   :  { %3822 = vmatprep.subr.bf16.mxu0 %v4451_v27 }
  0x6e   :  { %4140 = vmatpush3.bf16.msra.mxu1 %v4449_v25 }
  0x6f   :  { %4141 = vmatprep.subr.bf16.mxu1 %v4452_v29 }
  0x70   :  { %3823 = vmatpush3.bf16.msra.mxu0 %v4453_v30 }
  0x71   :  { %3824 = vmatprep.subr.bf16.mxu0 %v4454_v31 }
  0x72   :  { %4142 = vmatpush3.bf16.msra.mxu1 %v4452_v29 }
  0x73   :  { %4143 = vmatprep.subr.bf16.mxu1 %v4455_v32 }
  0x74   :  { %3825 = vmatpush3.bf16.msra.mxu0 %v4456_v35 }
  0x75   :  { %4149 = vmatprep.subr.bf16.mxu0 %v4457_v38 }
  0x76   :  { %4144 = vmatpush3.bf16.msra.mxu1 %v4455_v32 }
 0x12a   :  { %v3788_v39 = vpop.f32.mrb[0].mxu0 }
 0x12b   :  { %v3789_v40 = vpop.f32.mrb[1].mxu0 }
 0x12c   :  { %v3790_v42 = vadd.f32 %v3789_v40, %v3788_v39  ;;  %v3791_v43 = vpop.f32.mrb[2].mxu0  ;;  %v4127_v45 = vpop.f32.mrb[0].mxu1 }
 0x12d   :  { %v3792_v44 = vpop.f32.mrb[3].mxu0  ;;  %v422_v48 = vpop.f32.mrb[1].mxu1 }
 0x12e   :  { %v3793_v46 = vadd.f32 %v3792_v44, %v3791_v43  ;;  %v374_v47 = vadd.f32 %v3790_v42, %v3291_v41  ;;  %v4128_v49 = vpop.f32.mrb[2].mxu1  ;;  %v4458_v42 = vld [vmem:[#allocation2 + $0x8] sm:$0xff]   ;;  %v4459_v43 = vld [vmem:[#allocation2 + $0x10] sm:$0xff]   ;;  %v4460_v44 = vld [vmem:[#allocation2 + $0x18] sm:$0xff]  }
 0x12f   :  { %v425_v52 = vpop.f32.mrb[3].mxu1 }
 0x130   :  { %v423_v50 = vadd.f32 %v422_v48, %v374_v47  ;;  %v377_v51 = vadd.f32 %v3793_v46, %v3291_v41  ;;  %v4462_v46 = vld [vmem:[#allocation2 + $0x28] sm:$0xff]   ;;  %v4463_v47 = vld [vmem:[#allocation2 + $0x30] sm:$0xff]   ;;  %v4464_v48 = vld [vmem:[#allocation2 + $0x38] sm:$0xff]  }
 0x132   :  { %v437_v53 = vmax.f32 %v423_v50, 0.0  ;;  %v426_v54 = vadd.f32 %v425_v52, %v377_v51  ;;  %v3794_v55 = vpop.f32.mrb[4].mxu0  ;;  %v4467_v50 = vld [vmem:[#allocation2 + $0x50] sm:$0xff]   ;;  %v4468_v51 = vld [vmem:[#allocation2 + $0x58] sm:$0xff]   ;;  %v4469_v52 = vld [vmem:[#allocation2 + $0x60] sm:$0xff]  }
 0x133   :  { %v3795_v56 = vpop.f32.mrb[5].mxu0 }
 0x134   :  { %v438_v57 = vmax.f32 %v426_v54, 0.0  ;;  %v3796_v58 = vadd.f32 %v3795_v56, %v3794_v55  ;;  %v3797_v59 = vpop.f32.mrb[6].mxu0  ;;  %v441_v60 = vrot.slane %v437_v53, 7  ;;  %v453_v61 = vrot.slane %v437_v53, 1 }
 0x135   :  { %v3798_v63 = vpop.f32.mrb[7].mxu0 }
 0x136   :  { %v442_v0 = vrot.slane %v438_v57, 7  ;;  %v454_v1 = vrot.slane %v438_v57, 1  ;;  %v382_v2 = vadd.f32 %v3796_v58, %v3291_v41  ;;  %v3799_v3 = vadd.f32 %v3798_v63, %v3797_v59 }
 0x137   :  { %v466_v5 = vpack.c.bf16 %v438_v57, %v437_v53  ;;  %v4470_v53 = vld [vmem:[#allocation2 + $0x68] sm:$0xff]   ;;  %v3365_v57 = vld [vmem:[%s5528_s3 + $0x1] ss:$0 sm:$0xff] }
 0x138   :  { %v447_v6 = vsel %vm112_vm0, %v441_v60, %v442_v0  ;;  %v431_v7 = vadd.f32 %v4127_v45, %v382_v2  ;;  %v385_v8 = vadd.f32 %v3799_v3, %v3291_v41  ;;  %v459_v10 = vsel %vm125_vm4, %v453_v61, %v454_v1  ;;  %v4461_v45 = vld [vmem:[#allocation2 + $0x20] sm:$0xff]  }
 0x139   :  { %704 = vmatprep.mubr.bf16.mxu0 %v466_v5 }
 0x13a   :  { %v439_v11 = vmax.f32 %v431_v7, 0.0  ;;  %v434_v12 = vadd.f32 %v4128_v49, %v385_v8  ;;  %v4466_v49 = vld [vmem:[#allocation2 + $0x48] sm:$0xff]  }
 0x13c   :  { %v455_v13 = vrot.slane %v439_v11, 1  ;;  %v440_v14 = vmax.f32 %v434_v12, 0.0  ;;  %v443_v15 = vrot.slane %v439_v11, 7 }
 0x13e   :  { %v444_v16 = vrot.slane %v440_v14, 7  ;;  %v456_v17 = vrot.slane %v440_v14, 1  ;;  %v458_v19 = vsel %vm125_vm4, %v454_v1, %v455_v13  ;;  %v469_v21 = vpack.c.bf16 %v440_v14, %v439_v11 }
 0x13f   :  { %v462_v23 = vmul.f32 %v4912_v36, %v458_v19  ;;  %v446_v24 = vsel %vm112_vm0, %v442_v0, %v443_v15 }
 0x140   :  { %v448_v25 = vsel %vm112_vm0, %v444_v16, %v441_v60  ;;  %v457_v26 = vsel %vm125_vm4, %v455_v13, %v456_v17  ;;  %v460_v27 = vsel %vm125_vm4, %v456_v17, %v453_v61  ;;  %v445_v29 = vsel %vm112_vm0, %v443_v15, %v444_v16 }
 0x141   :  { %v467_v30 = vpack.c.bf16 %v462_v23, %v459_v10  ;;  %v449_v31 = vmul.f32 %v4904_v34, %v448_v25  ;;  %v464_v32 = vmul.f32 %v4915_v37, %v460_v27  ;;  %v451_v35 = vmul.f32 %v4951_v62, %v446_v24  ;;  %v4471_v27 = vld [vmem:[#allocation2 + $0x70] sm:$0xff]  }
 0x143   :  { %4145 = vmatprep.mubr.bf16.mxu1 %v467_v30  ;;  %v465_v39 = vpack.c.bf16 %v447_v6, %v449_v31  ;;  %v470_v40 = vpack.c.bf16 %v464_v32, %v457_v26  ;;  %v468_v41 = vpack.c.bf16 %v445_v29, %v451_v35  ;;  %v4472_v29 = vld [vmem:[#allocation2 + $0x78] sm:$0xff]   ;;  %v4473_v30 = vld [vmem:[%s5526_s1 + $0x1c0] sm:$0xff]   ;;  %v4476_v35 = vld [vmem:[%s5526_s1 + $0x1c8] sm:$0xff]  }
 0x144   :  { %v4474_v31 = vld [vmem:[%s5526_s1 + $0x180] sm:$0xff]  }
 0x145   :  { %705 = vmatmul.mubr.bf16.vlgmr.msra.gmra.mrb[8].mxu0 %v465_v39  ;;  %4146 = vmatmul.mubr.bf16.vlgmr.msra.gmra.mrb[4].mxu1 %v470_v40  ;;  %v4475_v32 = vld [vmem:[%s5526_s1 + $0x200] sm:$0xff]   ;;  %v4477_v39 = vld [vmem:[%s5526_s1 + $0x188] sm:$0xff]   ;;  %v4479_v40 = vld [vmem:[%s5526_s1 + $0x1d0] sm:$0xff]  }
 0x146   :  { %712 = vmatprep.mubr.bf16.mxu0 %v469_v21  ;;  %4150 = vmatpush3.bf16.msra.mxu0 %v4457_v38  ;;  %v4465_v38 = vld [vmem:[#allocation2 + $0x40] sm:$0xff]  }
 0x147   :  { %4151 = vmatprep.subr.bf16.mxu0 %v4458_v42  ;;  %4169 = vmatprep.subr.bf16.mxu1 %v4465_v38 }
 0x148   :  { %4170 = vmatpush3.bf16.msra.mxu1 %v4465_v38 }
 0x149   :  { %4171 = vmatprep.subr.bf16.mxu1 %v4466_v49 }
 0x14a   :  { %4152 = vmatpush3.bf16.msra.mxu0 %v4458_v42  ;;  %v4482_v42 = vld [vmem:[%s5526_s1 + $0x1d8] sm:$0xff]  }
 0x14b   :  { %4153 = vmatprep.subr.bf16.mxu0 %v4459_v43 }
 0x14c   :  { %4172 = vmatpush3.bf16.msra.mxu1 %v4466_v49 }
 0x14d   :  { %713 = vmatmul.mubr.bf16.gmra.mrb[12].mxu0 %v468_v41  ;;  %4173 = vmatprep.subr.bf16.mxu1 %v4467_v50  ;;  %v4480_v41 = vld [vmem:[%s5526_s1 + $0x190] sm:$0xff]  }
 0x14e   :  { %4154 = vmatpush3.bf16.msra.mxu0 %v4459_v43  ;;  %v4483_v43 = vld [vmem:[%s5526_s1 + $0x198] sm:$0xff]  }
 0x14f   :  { %4155 = vmatprep.subr.bf16.mxu0 %v4460_v44 }
 0x150   :  { %4174 = vmatpush3.bf16.msra.mxu1 %v4467_v50 }
 0x151   :  { %4175 = vmatprep.subr.bf16.mxu1 %v4468_v51 }
 0x152   :  { %4156 = vmatpush3.bf16.msra.mxu0 %v4460_v44  ;;  %v4485_v44 = vld [vmem:[%s5526_s1 + $0x1e0] sm:$0xff]  }
 0x153   :  { %4157 = vmatprep.subr.bf16.mxu0 %v4461_v45 }
 0x154   :  { %4176 = vmatpush3.bf16.msra.mxu1 %v4468_v51 }
 0x155   :  { %4177 = vmatprep.subr.bf16.mxu1 %v4469_v52 }
 0x156   :  { %4158 = vmatpush3.bf16.msra.mxu0 %v4461_v45  ;;  %v4486_v45 = vld [vmem:[%s5526_s1 + $0x1a0] sm:$0xff]  }
 0x157   :  { %4159 = vmatprep.subr.bf16.mxu0 %v4462_v46 }
 0x158   :  { %4178 = vmatpush3.bf16.msra.mxu1 %v4469_v52 }
 0x159   :  { %4179 = vmatprep.subr.bf16.mxu1 %v4470_v53 }
 0x15a   :  { %4160 = vmatpush3.bf16.msra.mxu0 %v4462_v46  ;;  %v3391_v46 = vld [vmem:[%s5528_s3 + $0x2] ss:$0 sm:$0xff] }
 0x15b   :  { %4161 = vmatprep.subr.bf16.mxu0 %v4463_v47 }
 0x15c   :  { %4180 = vmatpush3.bf16.msra.mxu1 %v4470_v53 }
 0x15d   :  { %4181 = vmatprep.subr.bf16.mxu1 %v4471_v27 }
 0x15e   :  { %4162 = vmatpush3.bf16.msra.mxu0 %v4463_v47 }
 0x15f   :  { %4163 = vmatprep.subr.bf16.mxu0 %v4464_v48 }
 0x160   :  { %4182 = vmatpush3.bf16.msra.mxu1 %v4471_v27 }
 0x161   :  { %4183 = vmatprep.subr.bf16.mxu1 %v4472_v29 }
 0x162   :  { %4164 = vmatpush3.bf16.msra.mxu0 %v4464_v48 }
 0x163   :  { %3868 = vmatprep.subr.bf16.mxu0 %v4473_v30 }
 0x164   :  { %4184 = vmatpush3.bf16.msra.mxu1 %v4472_v29 }
 0x165   :  { %4189 = vmatprep.subr.bf16.mxu1 %v4475_v32 }
 0x218   :  { %v3826_v54 = vpop.f32.mrb[8].mxu0  ;;  %v4147_v55 = vpop.f32.mrb[4].mxu1 }
 0x219   :  { %v3827_v56 = vpop.f32.mrb[9].mxu0  ;;  %v755_v58 = vpop.f32.mrb[5].mxu1 }
 0x21a   :  { %v3828_v59 = vadd.f32 %v3827_v56, %v3826_v54  ;;  %v3829_v60 = vpop.f32.mrb[10].mxu0  ;;  %v4148_v61 = vpop.f32.mrb[6].mxu1 }
 0x21b   :  { %v3830_v63 = vpop.f32.mrb[11].mxu0  ;;  %v758_v0 = vpop.f32.mrb[7].mxu1 }
 0x21c   :  { %v707_v1 = vadd.f32 %v3828_v59, %v3365_v57  ;;  %v3831_v2 = vadd.f32 %v3830_v63, %v3829_v60  ;;  %v4478_v60 = vld [vmem:[%s5526_s1 + $0x208] sm:$0xff]   ;;  %v4484_v63 = vld [vmem:[%s5526_s1 + $0x218] sm:$0xff]  }
 0x21e   :  { %v756_v3 = vadd.f32 %v755_v58, %v707_v1  ;;  %v710_v5 = vadd.f32 %v3831_v2, %v3365_v57  ;;  %v4488_v1 = vld [vmem:[%s5526_s1 + $0x1e8] sm:$0xff]  }
 0x21f   :  { %v4489_v2 = vld [vmem:[%s5526_s1 + $0x1a8] sm:$0xff]  }
 0x220   :  { %v759_v6 = vadd.f32 %v758_v0, %v710_v5  ;;  %v3832_v7 = vpop.f32.mrb[12].mxu0  ;;  %v770_v10 = vmax.f32 %v756_v3, 0.0  ;;  %v4487_v0 = vld [vmem:[%s5526_s1 + $0x220] sm:$0xff]   ;;  %v4490_v3 = vld [vmem:[%s5526_s1 + $0x228] sm:$0xff]   ;;  %v4491_v5 = vld [vmem:[%s5526_s1 + $0x1f0] sm:$0xff]  }
 0x221   :  { %v3833_v8 = vpop.f32.mrb[13].mxu0 }
 0x222   :  { %v771_v11 = vmax.f32 %v759_v6, 0.0  ;;  %v3834_v12 = vadd.f32 %v3833_v8, %v3832_v7  ;;  %v3835_v13 = vpop.f32.mrb[14].mxu0  ;;  %v4492_v6 = vld [vmem:[%s5526_s1 + $0x1b0] sm:$0xff]   ;;  %v4494_v8 = vld [vmem:[%s5526_s1 + $0x1f8] sm:$0xff]  }
 0x223   :  { %v3836_v14 = vpop.f32.mrb[15].mxu0  ;;  %v4493_v7 = vld [vmem:[%s5526_s1 + $0x230] sm:$0xff]  }
 0x224   :  { %v774_v15 = vpack.c.bf16 %v771_v11, %v770_v10  ;;  %v715_v16 = vadd.f32 %v3834_v12, %v3365_v57  ;;  %v3837_v17 = vadd.f32 %v3836_v14, %v3835_v13  ;;  %v4495_v10 = vld [vmem:[%s5526_s1 + $0x1b8] sm:$0xff]   ;;  %v4497_v12 = vld [vmem:[#allocation2 + $0x80] sm:$0xff]  }
 0x225   :  { %v4496_v11 = vld [vmem:[%s5526_s1 + $0x238] sm:$0xff]   ;;  %v3401_v13 = vld [vmem:[%s5528_s3 + $0x3] ss:$0 sm:$0xff] }
 0x226   :  { %v764_v19 = vadd.f32 %v4147_v55, %v715_v16  ;;  %v718_v21 = vadd.f32 %v3837_v17, %v3365_v57  ;;  %4165 = vmatprep.mubr.bf16.mxu0 %v774_v15 }
 0x228   :  { %v767_v23 = vadd.f32 %v4148_v61, %v718_v21  ;;  %v772_v24 = vmax.f32 %v764_v19, 0.0  ;;  %v4481_v61 = vld [vmem:[%s5526_s1 + $0x210] sm:$0xff]  }
 0x22a   :  { %v773_v25 = vmax.f32 %v767_v23, 0.0 }
 0x22c   :  { %v775_v26 = vpack.c.bf16 %v773_v25, %v772_v24 }
 0x22e   :  { %4166 = vmatmul.mubr.bf16.vlgmr.msra.gmra.mrb[16].mxu0 %v775_v26 }
 0x22f   :  { %3869 = vmatpush3.bf16.msra.mxu0 %v4474_v31 }
 0x230   :  { %3870 = vmatprep.subr.bf16.mxu0 %v4476_v35 }
 0x233   :  { %3871 = vmatpush3.bf16.msra.mxu0 %v4477_v39 }
 0x234   :  { %3872 = vmatprep.subr.bf16.mxu0 %v4479_v40 }
 0x237   :  { %3873 = vmatpush3.bf16.msra.mxu0 %v4480_v41 }
 0x238   :  { %3874 = vmatprep.subr.bf16.mxu0 %v4482_v42 }
 0x23b   :  { %3875 = vmatpush3.bf16.msra.mxu0 %v4483_v43 }
 0x23c   :  { %3876 = vmatprep.subr.bf16.mxu0 %v4485_v44 }
 0x23f   :  { %3877 = vmatpush3.bf16.msra.mxu0 %v4486_v45 }
 0x240   :  { %3878 = vmatprep.subr.bf16.mxu0 %v4488_v1  ;;  %v4506_v1 = vld [vmem:[%s5526_s1 + $0x240] sm:$0xff]  }
 0x243   :  { %3879 = vmatpush3.bf16.msra.mxu0 %v4489_v2  ;;  %v4507_v2 = vld [vmem:[%s5526_s1 + $0x2c0] sm:$0xff]  }
 0x244   :  { %3880 = vmatprep.subr.bf16.mxu0 %v4491_v5  ;;  %v4509_v5 = vld [vmem:[%s5526_s1 + $0x248] sm:$0xff]  }
 0x247   :  { %3881 = vmatpush3.bf16.msra.mxu0 %v4492_v6  ;;  %v4511_v6 = vld [vmem:[%s5526_s1 + $0x290] sm:$0xff]  }
 0x248   :  { %3882 = vmatprep.subr.bf16.mxu0 %v4494_v8  ;;  %v4514_v8 = vld [vmem:[%s5526_s1 + $0x298] sm:$0xff]  }
 0x24b   :  { %3883 = vmatpush3.bf16.msra.mxu0 %v4495_v10  ;;  %v4515_v10 = vld [vmem:[%s5526_s1 + $0x258] sm:$0xff]  }
 0x24c   :  { %4209 = vmatprep.subr.bf16.mxu0 %v4497_v12 }
 0x301   :  { %v4167_v47 = vpop.f32.mrb[16].mxu0 }
 0x302   :  { %v891_v48 = vadd.f32 %v4167_v47, %v3391_v46  ;;  %v882_v38 = vpop.f32.mrb[17].mxu0 }
 0x303   :  { %v883_v49 = vadd.f32 %v3391_v46, %v882_v38  ;;  %v4168_v50 = vpop.f32.mrb[18].mxu0 }
 0x304   :  { %v894_v51 = vadd.f32 %v4168_v50, %v3391_v46  ;;  %v885_v52 = vpop.f32.mrb[19].mxu0  ;;  %v899_v54 = vmax.f32 %v891_v48, 0.0 }
 0x305   :  { %v886_v53 = vadd.f32 %v3391_v46, %v885_v52  ;;  %v897_v56 = vmax.f32 %v883_v49, 0.0  ;;  %v4498_v52 = vld [vmem:[#allocation2 + $0x88] sm:$0xff]  }
 0x306   :  { %v900_v55 = vmax.f32 %v894_v51, 0.0 }
 0x307   :  { %v898_v57 = vmax.f32 %v886_v53, 0.0 }
 0x308   :  { %v902_v58 = vpack.c.bf16 %v900_v55, %v899_v54  ;;  %v4499_v55 = vld [vmem:[#allocation2 + $0x90] sm:$0xff]  }
 0x309   :  { %v901_v59 = vpack.c.bf16 %v898_v57, %v897_v56 }
 0x30b   :  { %4185 = vmatprep.mubr.bf16.mxu1 %v901_v59  ;;  %v4501_v59 = vld [vmem:[#allocation2 + $0xa0] sm:$0xff]  }
 0x30c   :  { %4186 = vmatmul.mubr.bf16.vlgmr.msra.gmra.mrb[8].mxu1 %v902_v58  ;;  %v4500_v58 = vld [vmem:[#allocation2 + $0x98] sm:$0xff]  }
 0x30d   :  { %4190 = vmatpush3.bf16.msra.mxu1 %v4475_v32 }
 0x30e   :  { %4191 = vmatprep.subr.bf16.mxu1 %v4478_v60 }
 0x311   :  { %4192 = vmatpush3.bf16.msra.mxu1 %v4478_v60  ;;  %v4502_v60 = vld [vmem:[#allocation2 + $0xa8] sm:$0xff]  }
 0x312   :  { %4193 = vmatprep.subr.bf16.mxu1 %v4481_v61 }
 0x315   :  { %4194 = vmatpush3.bf16.msra.mxu1 %v4481_v61  ;;  %v4503_v61 = vld [vmem:[#allocation2 + $0xb0] sm:$0xff]  }
 0x316   :  { %4195 = vmatprep.subr.bf16.mxu1 %v4484_v63 }
 0x319   :  { %4196 = vmatpush3.bf16.msra.mxu1 %v4484_v63  ;;  %v4504_v63 = vld [vmem:[#allocation2 + $0xb8] sm:$0xff]  }
 0x31a   :  { %4197 = vmatprep.subr.bf16.mxu1 %v4487_v0 }
 0x31d   :  { %4198 = vmatpush3.bf16.msra.mxu1 %v4487_v0  ;;  %v4505_v0 = vld [vmem:[%s5526_s1 + $0x280] sm:$0xff]  }
 0x31e   :  { %4199 = vmatprep.subr.bf16.mxu1 %v4490_v3 }
 0x321   :  { %4200 = vmatpush3.bf16.msra.mxu1 %v4490_v3  ;;  %v4508_v3 = vld [vmem:[%s5526_s1 + $0x288] sm:$0xff]  }
 0x322   :  { %4201 = vmatprep.subr.bf16.mxu1 %v4493_v7 }
 0x325   :  { %4202 = vmatpush3.bf16.msra.mxu1 %v4493_v7  ;;  %v4512_v7 = vld [vmem:[%s5526_s1 + $0x250] sm:$0xff]  }
 0x326   :  { %4203 = vmatprep.subr.bf16.mxu1 %v4496_v11 }
 0x329   :  { %4204 = vmatpush3.bf16.msra.mxu1 %v4496_v11 }
 0x32a   :  { %3916 = vmatprep.subr.bf16.mxu1 %v4505_v0  ;;  %v4523_v0 = vld [vmem:[%s5526_s1 + $0x2b0] sm:$0xff]  }
 0x3df   :  { %v4187_v14 = vpop.f32.mrb[8].mxu1 }
 0x3e0   :  { %v1010_v15 = vpop.f32.mrb[9].mxu1  ;;  %v5128_v16 = vadd.f32 %v4187_v14, %v3401_v13 }
 0x3e1   :  { %v5130_v17 = vadd.f32 %v3401_v13, %v1010_v15  ;;  %v4188_v19 = vpop.f32.mrb[10].mxu1 }
 0x3e2   :  { %v5132_v21 = vadd.f32 %v4188_v19, %v3401_v13  ;;  %v1013_v23 = vpop.f32.mrb[11].mxu1  ;;  %v1039_v30 = vrot.slane %v5128_v16, 1  ;;  %v1027_v44 = vrot.slane %v5128_v16, 7 }
 0x3e3   :  { %v1025_v24 = vrot.slane %v5130_v17, 7  ;;  %v1037_v25 = vrot.slane %v5130_v17, 1  ;;  %v5136_v26 = vadd.f32 %v3401_v13, %v1013_v23  ;;  %v3459_v13 = vld [vmem:[%s5528_s3 + $0x4] ss:$0 sm:$0xff] }
 0x3e4   :  { %v1028_v27 = vrot.slane %v5132_v21, 7  ;;  %v1040_v29 = vrot.slane %v5132_v21, 1  ;;  %v1053_v38 = vpack.c.bf16 %v5132_v21, %v5128_v16 }
 0x3e5   :  { %v1026_v31 = vrot.slane %v5136_v26, 7  ;;  %v1038_v32 = vrot.slane %v5136_v26, 1  ;;  %v1050_v35 = vpack.c.bf16 %v5136_v26, %v5130_v17 }
 0x3e6   :  { %v1032_v39 = vsel %vm112_vm0, %v1028_v27, %v1025_v24  ;;  %v1044_v40 = vsel %vm125_vm4, %v1040_v29, %v1037_v25  ;;  %v1041_v50 = vsel %vm125_vm4, %v1039_v30, %v1040_v29  ;;  %v1029_v56 = vsel %vm112_vm0, %v1027_v44, %v1028_v27 }
 0x3e7   :  { %1288 = vmatprep.mubr.bf16.mxu0 %v1050_v35  ;;  %v1031_v41 = vsel %vm112_vm0, %v1025_v24, %v1026_v31  ;;  %v1033_v42 = vmul.f32 %v4904_v34, %v1032_v39  ;;  %v1042_v43 = vsel %vm125_vm4, %v1038_v32, %v1039_v30  ;;  %v1048_v46 = vmul.f32 %v4915_v37, %v1044_v40 }
 0x3e8   :  { %v1046_v45 = vmul.f32 %v4912_v36, %v1042_v43  ;;  %v1043_v48 = vsel %vm125_vm4, %v1037_v25, %v1038_v32  ;;  %v1030_v51 = vsel %vm112_vm0, %v1026_v31, %v1027_v44 }
 0x3e9   :  { %v1049_v47 = vpack.c.bf16 %v1031_v41, %v1033_v42  ;;  %v1054_v53 = vpack.c.bf16 %v1048_v46, %v1041_v50  ;;  %v1035_v54 = vmul.f32 %v4951_v62, %v1030_v51 }
 0x3ea   :  { %v1051_v49 = vpack.c.bf16 %v1046_v45, %v1043_v48 }
 0x3eb   :  { %1289 = vmatmul.mubr.bf16.vlgmr.msra.gmra.mrb[20].mxu0 %v1049_v47  ;;  %v1052_v57 = vpack.c.bf16 %v1029_v56, %v1035_v54  ;;  %v4510_v54 = vld [vmem:[%s5526_s1 + $0x2c8] sm:$0xff]   ;;  %v4516_v56 = vld [vmem:[%s5526_s1 + $0x2d8] sm:$0xff]  }
 0x3ec   :  { %1296 = vmatprep.mubr.bf16.mxu0 %v1053_v38  ;;  %4205 = vmatprep.mubr.bf16.mxu1 %v1051_v49 }
 0x3ed   :  { %4206 = vmatmul.mubr.bf16.vlgmr.msra.gmra.mrb[12].mxu1 %v1054_v53  ;;  %4210 = vmatpush3.bf16.msra.mxu0 %v4497_v12 }
 0x3ee   :  { %4211 = vmatprep.subr.bf16.mxu0 %v4498_v52  ;;  %3917 = vmatpush3.bf16.msra.mxu1 %v4506_v1  ;;  %v4524_v1 = vld [vmem:[%s5526_s1 + $0x270] sm:$0xff]  }
 0x3ef   :  { %3918 = vmatprep.subr.bf16.mxu1 %v4508_v3  ;;  %v4526_v3 = vld [vmem:[%s5526_s1 + $0x2b8] sm:$0xff]  }
 0x3f1   :  { %4212 = vmatpush3.bf16.msra.mxu0 %v4498_v52 }
 0x3f2   :  { %4213 = vmatprep.subr.bf16.mxu0 %v4499_v55  ;;  %3919 = vmatpush3.bf16.msra.mxu1 %v4509_v5  ;;  %v4527_v5 = vld [vmem:[%s5526_s1 + $0x278] sm:$0xff]  }
 0x3f3   :  { %1297 = vmatmul.mubr.bf16.gmra.mrb[24].mxu0 %v1052_v57  ;;  %3920 = vmatprep.subr.bf16.mxu1 %v4511_v6  ;;  %v4517_v57 = vld [vmem:[%s5526_s1 + $0x2a0] sm:$0xff]   ;;  %v4528_v6 = vld [vmem:[%s5526_s1 + $0x2f8] sm:$0xff]  }
 0x3f5   :  { %4214 = vmatpush3.bf16.msra.mxu0 %v4499_v55  ;;  %v4513_v55 = vld [vmem:[%s5526_s1 + $0x2d0] sm:$0xff]  }
 0x3f6   :  { %4215 = vmatprep.subr.bf16.mxu0 %v4500_v58  ;;  %3921 = vmatpush3.bf16.msra.mxu1 %v4512_v7  ;;  %v4529_v7 = vld [vmem:[#allocation2 + $0xc0] sm:$0xff]  }
 0x3f7   :  { %3922 = vmatprep.subr.bf16.mxu1 %v4514_v8  ;;  %v3485_v8 = vld [vmem:[%s5528_s3 + $0x5] ss:$0 sm:$0xff] }
 0x3f9   :  { %4216 = vmatpush3.bf16.msra.mxu0 %v4500_v58  ;;  %v4518_v58 = vld [vmem:[%s5526_s1 + $0x260] sm:$0xff]  }
 0x3fa   :  { %4217 = vmatprep.subr.bf16.mxu0 %v4501_v59  ;;  %3923 = vmatpush3.bf16.msra.mxu1 %v4515_v10 }
 0x3fb   :  { %3924 = vmatprep.subr.bf16.mxu1 %v4517_v57 }
 0x3fd   :  { %4218 = vmatpush3.bf16.msra.mxu0 %v4501_v59  ;;  %v4519_v59 = vld [vmem:[%s5526_s1 + $0x2e0] sm:$0xff]  }
 0x3fe   :  { %4219 = vmatprep.subr.bf16.mxu0 %v4502_v60  ;;  %3925 = vmatpush3.bf16.msra.mxu1 %v4518_v58 }
 0x401   :  { %4220 = vmatpush3.bf16.msra.mxu0 %v4502_v60  ;;  %v4520_v60 = vld [vmem:[%s5526_s1 + $0x2a8] sm:$0xff]  }
 0x402   :  { %4221 = vmatprep.subr.bf16.mxu0 %v4503_v61  ;;  %3926 = vmatprep.subr.bf16.mxu1 %v4520_v60 }
 0x405   :  { %4222 = vmatpush3.bf16.msra.mxu0 %v4503_v61  ;;  %v4521_v61 = vld [vmem:[%s5526_s1 + $0x268] sm:$0xff]  }
 0x406   :  { %4223 = vmatprep.subr.bf16.mxu0 %v4504_v63  ;;  %3927 = vmatpush3.bf16.msra.mxu1 %v4521_v61 }
 0x407   :  { %3928 = vmatprep.subr.bf16.mxu1 %v4523_v0  ;;  %v4533_v0 = vld [vmem:[#allocation2 + $0xe0] sm:$0xff]  }
 0x409   :  { %4224 = vmatpush3.bf16.msra.mxu0 %v4504_v63  ;;  %v4522_v63 = vld [vmem:[%s5526_s1 + $0x2e8] sm:$0xff]  }
 0x40a   :  { %4229 = vmatprep.subr.bf16.mxu0 %v4507_v2  ;;  %3929 = vmatpush3.bf16.msra.mxu1 %v4524_v1  ;;  %v4534_v1 = vld [vmem:[#allocation2 + $0xe8] sm:$0xff]  }
 0x40b   :  { %3930 = vmatprep.subr.bf16.mxu1 %v4526_v3  ;;  %v4536_v3 = vld [vmem:[#allocation2 + $0xf8] sm:$0xff]  }
 0x40e   :  { %3931 = vmatpush3.bf16.msra.mxu1 %v4527_v5  ;;  %v4537_v5 = vld [vmem:[%s5526_s1 + $0x340] sm:$0xff]  }
 0x40f   :  { %4249 = vmatprep.subr.bf16.mxu1 %v4529_v7 }
 0x4be   :  { %v3884_v11 = vpop.f32.mrb[20].mxu0 }
 0x4bf   :  { %v3885_v12 = vpop.f32.mrb[21].mxu0 }
 0x4c0   :  { %v3886_v14 = vadd.f32 %v3885_v12, %v3884_v11  ;;  %v3887_v15 = vpop.f32.mrb[22].mxu0  ;;  %v4207_v19 = vpop.f32.mrb[12].mxu1 }
 0x4c1   :  { %v3888_v23 = vpop.f32.mrb[23].mxu0  ;;  %v1339_v24 = vpop.f32.mrb[13].mxu1 }
 0x4c2   :  { %v3889_v25 = vadd.f32 %v3888_v23, %v3887_v15  ;;  %v1291_v27 = vadd.f32 %v3886_v14, %v3459_v13  ;;  %v4208_v29 = vpop.f32.mrb[14].mxu1 }
 0x4c3   :  { %v1342_v30 = vpop.f32.mrb[15].mxu1 }
 0x4c4   :  { %v1340_v31 = vadd.f32 %v1339_v24, %v1291_v27  ;;  %v1294_v32 = vadd.f32 %v3889_v25, %v3459_v13 }
 0x4c6   :  { %v1343_v35 = vadd.f32 %v1342_v30, %v1294_v32  ;;  %v3890_v39 = vpop.f32.mrb[24].mxu0  ;;  %v1354_v41 = vmax.f32 %v1340_v31, 0.0 }
 0x4c7   :  { %v3891_v40 = vpop.f32.mrb[25].mxu0 }
 0x4c8   :  { %v1355_v42 = vmax.f32 %v1343_v35, 0.0  ;;  %v3892_v43 = vadd.f32 %v3891_v40, %v3890_v39  ;;  %v3893_v44 = vpop.f32.mrb[26].mxu0 }
 0x4c9   :  { %v3894_v45 = vpop.f32.mrb[27].mxu0 }
 0x4ca   :  { %v1358_v46 = vpack.c.bf16 %v1355_v42, %v1354_v41  ;;  %v1299_v47 = vadd.f32 %v3892_v43, %v3459_v13  ;;  %v3895_v48 = vadd.f32 %v3894_v45, %v3893_v44 }
 0x4cc   :  { %v1348_v38 = vadd.f32 %v4207_v19, %v1299_v47  ;;  %v1302_v49 = vadd.f32 %v3895_v48, %v3459_v13  ;;  %4225 = vmatprep.mubr.bf16.mxu0 %v1358_v46 }
 0x4ce   :  { %v1351_v50 = vadd.f32 %v4208_v29, %v1302_v49  ;;  %v1356_v51 = vmax.f32 %v1348_v38, 0.0 }
 0x4d0   :  { %v1357_v52 = vmax.f32 %v1351_v50, 0.0 }
 0x4d2   :  { %v1359_v53 = vpack.c.bf16 %v1357_v52, %v1356_v51 }
 0x4d4   :  { %4226 = vmatmul.mubr.bf16.vlgmr.msra.gmra.mrb[28].mxu0 %v1359_v53 }
 0x4d5   :  { %4230 = vmatpush3.bf16.msra.mxu0 %v4507_v2  ;;  %v4525_v2 = vld [vmem:[%s5526_s1 + $0x2f0] sm:$0xff]  }
 0x4d6   :  { %4231 = vmatprep.subr.bf16.mxu0 %v4510_v54 }
 0x4d9   :  { %4232 = vmatpush3.bf16.msra.mxu0 %v4510_v54 }
 0x4da   :  { %4233 = vmatprep.subr.bf16.mxu0 %v4513_v55 }
 0x4dd   :  { %4234 = vmatpush3.bf16.msra.mxu0 %v4513_v55 }
 0x4de   :  { %4235 = vmatprep.subr.bf16.mxu0 %v4516_v56 }
 0x4e1   :  { %4236 = vmatpush3.bf16.msra.mxu0 %v4516_v56  ;;  %v4530_v56 = vld [vmem:[#allocation2 + $0xc8] sm:$0xff]  }
 0x4e2   :  { %4237 = vmatprep.subr.bf16.mxu0 %v4519_v59 }
 0x4e5   :  { %4238 = vmatpush3.bf16.msra.mxu0 %v4519_v59  ;;  %v4531_v59 = vld [vmem:[#allocation2 + $0xd0] sm:$0xff]  }
 0x4e6   :  { %4239 = vmatprep.subr.bf16.mxu0 %v4522_v63 }
 0x4e9   :  { %4240 = vmatpush3.bf16.msra.mxu0 %v4522_v63  ;;  %v4532_v63 = vld [vmem:[#allocation2 + $0xd8] sm:$0xff]  }
 0x4ea   :  { %4241 = vmatprep.subr.bf16.mxu0 %v4525_v2 }
 0x4ed   :  { %4242 = vmatpush3.bf16.msra.mxu0 %v4525_v2  ;;  %v4535_v2 = vld [vmem:[#allocation2 + $0xf0] sm:$0xff]  }
 0x4ee   :  { %4243 = vmatprep.subr.bf16.mxu0 %v4528_v6 }
 0x4f1   :  { %4244 = vmatpush3.bf16.msra.mxu0 %v4528_v6  ;;  %v4538_v6 = vld [vmem:[%s5526_s1 + $0x300] sm:$0xff]  }
 0x4f2   :  { %3964 = vmatprep.subr.bf16.mxu0 %v4537_v5  ;;  %v4555_v5 = vld [vmem:[%s5526_s1 + $0x370] sm:$0xff]  }
 0x5a7   :  { %v4227_v10 = vpop.f32.mrb[28].mxu0 }
 0x5a8   :  { %v1476_v11 = vadd.f32 %v4227_v10, %v3485_v8  ;;  %v1467_v12 = vpop.f32.mrb[29].mxu0  ;;  %v4541_v10 = vld [vmem:[%s5526_s1 + $0x308] sm:$0xff]  }
 0x5a9   :  { %v1468_v13 = vadd.f32 %v3485_v8, %v1467_v12  ;;  %v4228_v14 = vpop.f32.mrb[30].mxu0  ;;  %v4544_v12 = vld [vmem:[%s5526_s1 + $0x310] sm:$0xff]  }
 0x5aa   :  { %v1484_v15 = vadd.f32 %v1476_v11, %v5128_v16  ;;  %v1479_v19 = vadd.f32 %v4228_v14, %v3485_v8  ;;  %v1470_v23 = vpop.f32.mrb[31].mxu0  ;;  %v4543_v11 = vld [vmem:[%s5526_s1 + $0x350] sm:$0xff]   ;;  %v4547_v14 = vld [vmem:[%s5526_s1 + $0x318] sm:$0xff]  }
 0x5ab   :  { %v1482_v24 = vadd.f32 %v1468_v13, %v5130_v17  ;;  %v1471_v25 = vadd.f32 %v3485_v8, %v1470_v23  ;;  %v4540_v8 = vld [vmem:[%s5526_s1 + $0x348] sm:$0xff]   ;;  %v4546_v13 = vld [vmem:[%s5526_s1 + $0x358] sm:$0xff]   ;;  %v3543_v23 = vld [vmem:[%s5528_s3 + $0x6] ss:$0 sm:$0xff] }
 0x5ac   :  { %v1485_v27 = vadd.f32 %v1479_v19, %v5132_v21  ;;  %v5249_v29 = vmax.f32 %v1484_v15, 0.0 }
 0x5ad   :  { %v5251_v30 = vmax.f32 %v1482_v24, 0.0  ;;  %v1483_v31 = vadd.f32 %v1471_v25, %v5136_v26 }
 0x5ae   :  { %v5254_v32 = vmax.f32 %v1485_v27, 0.0  ;;  %v1504_v21 = vrot.slane %v5249_v29, 1  ;;  %v1492_v49 = vrot.slane %v5249_v29, 7 }
 0x5af   :  { %v1490_v35 = vrot.slane %v5251_v30, 7  ;;  %v5257_v39 = vmax.f32 %v1483_v31, 0.0  ;;  %v1502_v16 = vrot.slane %v5251_v30, 1 }
 0x5b0   :  { %v1493_v40 = vrot.slane %v5254_v32, 7  ;;  %v1505_v17 = vrot.slane %v5254_v32, 1  ;;  %v1518_v52 = vpack.c.bf16 %v5254_v32, %v5249_v29 }
 0x5b1   :  { %v1491_v41 = vrot.slane %v5257_v39, 7  ;;  %v1515_v42 = vpack.c.bf16 %v5257_v39, %v5251_v30  ;;  %v1503_v26 = vrot.slane %v5257_v39, 1 }
 0x5b2   :  { %v1497_v43 = vsel %vm112_vm0, %v1493_v40, %v1490_v35  ;;  %v1509_v44 = vsel %vm125_vm4, %v1505_v17, %v1502_v16  ;;  %v1506_v54 = vsel %vm125_vm4, %v1504_v21, %v1505_v17  ;;  %v1494_v60 = vsel %vm112_vm0, %v1492_v49, %v1493_v40 }
 0x5b3   :  { %1753 = vmatprep.mubr.bf16.mxu1 %v1515_v42  ;;  %v1496_v45 = vsel %vm112_vm0, %v1490_v35, %v1491_v41  ;;  %v1498_v46 = vmul.f32 %v4904_v34, %v1497_v43  ;;  %v1507_v47 = vsel %vm125_vm4, %v1503_v26, %v1504_v21  ;;  %v1513_v38 = vmul.f32 %v4915_v37, %v1509_v44 }
 0x5b4   :  { %v1511_v48 = vmul.f32 %v4912_v36, %v1507_v47  ;;  %v1508_v51 = vsel %vm125_vm4, %v1502_v16, %v1503_v26  ;;  %v1495_v55 = vsel %vm112_vm0, %v1491_v41, %v1492_v49 }
 0x5b5   :  { %v1514_v50 = vpack.c.bf16 %v1496_v45, %v1498_v46  ;;  %v1519_v57 = vpack.c.bf16 %v1513_v38, %v1506_v54  ;;  %v1500_v58 = vmul.f32 %v4951_v62, %v1495_v55 }
 0x5b6   :  { %v1516_v53 = vpack.c.bf16 %v1511_v48, %v1508_v51 }
 0x5b7   :  { %1754 = vmatmul.mubr.bf16.vlgmr.msra.gmra.mrb[16].mxu1 %v1514_v50  ;;  %v1517_v61 = vpack.c.bf16 %v1494_v60, %v1500_v58  ;;  %v4542_v58 = vld [vmem:[%s5526_s1 + $0x388] sm:$0xff]   ;;  %v4548_v60 = vld [vmem:[%s5526_s1 + $0x398] sm:$0xff]  }
 0x5b8   :  { %1761 = vmatprep.mubr.bf16.mxu1 %v1518_v52  ;;  %4245 = vmatprep.mubr.bf16.mxu0 %v1516_v53 }
 0x5b9   :  { %4246 = vmatmul.mubr.bf16.vlgmr.msra.gmra.mrb[32].mxu0 %v1519_v57  ;;  %4250 = vmatpush3.bf16.msra.mxu1 %v4529_v7  ;;  %v4539_v7 = vld [vmem:[%s5526_s1 + $0x380] sm:$0xff]  }
 0x5ba   :  { %4251 = vmatprep.subr.bf16.mxu1 %v4530_v56  ;;  %3965 = vmatpush3.bf16.msra.mxu0 %v4538_v6  ;;  %v4556_v6 = vld [vmem:[%s5526_s1 + $0x330] sm:$0xff]  }
 0x5bb   :  { %3966 = vmatprep.subr.bf16.mxu0 %v4540_v8  ;;  %v4558_v8 = vld [vmem:[%s5526_s1 + $0x378] sm:$0xff]  }
 0x5bd   :  { %4252 = vmatpush3.bf16.msra.mxu1 %v4530_v56 }
 0x5be   :  { %4253 = vmatprep.subr.bf16.mxu1 %v4531_v59  ;;  %3967 = vmatpush3.bf16.msra.mxu0 %v4541_v10  ;;  %v4559_v10 = vld [vmem:[%s5526_s1 + $0x338] sm:$0xff]  }
 0x5bf   :  { %1762 = vmatmul.mubr.bf16.gmra.mrb[20].mxu1 %v1517_v61  ;;  %3968 = vmatprep.subr.bf16.mxu0 %v4543_v11  ;;  %v4549_v61 = vld [vmem:[%s5526_s1 + $0x360] sm:$0xff]   ;;  %v4560_v11 = vld [vmem:[%s5526_s1 + $0x3b8] sm:$0xff]  }
 0x5c1   :  { %4254 = vmatpush3.bf16.msra.mxu1 %v4531_v59  ;;  %v4545_v59 = vld [vmem:[%s5526_s1 + $0x390] sm:$0xff]  }
 0x5c2   :  { %4255 = vmatprep.subr.bf16.mxu1 %v4532_v63  ;;  %3969 = vmatpush3.bf16.msra.mxu0 %v4544_v12  ;;  %v4561_v12 = vld [vmem:[#allocation2 + $0x100] sm:$0xff]  }
 0x5c3   :  { %3970 = vmatprep.subr.bf16.mxu0 %v4546_v13  ;;  %v3569_v13 = vld [vmem:[%s5528_s3 + $0x7] ss:$0 sm:$0xff] }
 0x5c5   :  { %4256 = vmatpush3.bf16.msra.mxu1 %v4532_v63  ;;  %v4550_v63 = vld [vmem:[%s5526_s1 + $0x320] sm:$0xff]  }
 0x5c6   :  { %4257 = vmatprep.subr.bf16.mxu1 %v4533_v0  ;;  %3971 = vmatpush3.bf16.msra.mxu0 %v4547_v14 }
 0x5c7   :  { %3972 = vmatprep.subr.bf16.mxu0 %v4549_v61 }
 0x5c9   :  { %4258 = vmatpush3.bf16.msra.mxu1 %v4533_v0  ;;  %v4551_v0 = vld [vmem:[%s5526_s1 + $0x3a0] sm:$0xff]  }
 0x5ca   :  { %4259 = vmatprep.subr.bf16.mxu1 %v4534_v1  ;;  %3973 = vmatpush3.bf16.msra.mxu0 %v4550_v63 }
 0x5cd   :  { %4260 = vmatpush3.bf16.msra.mxu1 %v4534_v1  ;;  %v4552_v1 = vld [vmem:[%s5526_s1 + $0x368] sm:$0xff]  }
 0x5ce   :  { %4261 = vmatprep.subr.bf16.mxu1 %v4535_v2  ;;  %3974 = vmatprep.subr.bf16.mxu0 %v4552_v1 }
 0x5d1   :  { %4262 = vmatpush3.bf16.msra.mxu1 %v4535_v2  ;;  %v4553_v2 = vld [vmem:[%s5526_s1 + $0x328] sm:$0xff]  }
 0x5d2   :  { %4263 = vmatprep.subr.bf16.mxu1 %v4536_v3  ;;  %3975 = vmatpush3.bf16.msra.mxu0 %v4553_v2  ;;  %v4563_v2 = vld [vmem:[#allocation2 + $0x110] sm:$0xff]  }
 0x5d3   :  { %3976 = vmatprep.subr.bf16.mxu0 %v4555_v5  ;;  %v4565_v5 = vld [vmem:[#allocation2 + $0x120] sm:$0xff]  }
 0x5d5   :  { %4264 = vmatpush3.bf16.msra.mxu1 %v4536_v3  ;;  %v4554_v3 = vld [vmem:[%s5526_s1 + $0x3a8] sm:$0xff]  }
 0x5d6   :  { %4269 = vmatprep.subr.bf16.mxu1 %v4539_v7  ;;  %3977 = vmatpush3.bf16.msra.mxu0 %v4556_v6  ;;  %v4566_v6 = vld [vmem:[#allocation2 + $0x128] sm:$0xff]  }
 0x5d7   :  { %3978 = vmatprep.subr.bf16.mxu0 %v4558_v8  ;;  %v4568_v8 = vld [vmem:[#allocation2 + $0x138] sm:$0xff]  }
 0x5da   :  { %3979 = vmatpush3.bf16.msra.mxu0 %v4559_v10  ;;  %v4569_v10 = vld [vmem:[%s5526_s1 + $0x400] sm:$0xff]  }
 0x5db   :  { %4289 = vmatprep.subr.bf16.mxu0 %v4561_v12 }
 0x68a   :  { %v3932_v15 = vpop.f32.mrb[16].mxu1 }
 0x68b   :  { %v3933_v19 = vpop.f32.mrb[17].mxu1 }
 0x68c   :  { %v3934_v24 = vadd.f32 %v3933_v19, %v3932_v15  ;;  %v3935_v25 = vpop.f32.mrb[18].mxu1  ;;  %v4247_v27 = vpop.f32.mrb[32].mxu0 }
 0x68d   :  { %v3936_v31 = vpop.f32.mrb[19].mxu1  ;;  %v1804_v35 = vpop.f32.mrb[33].mxu0 }
 0x68e   :  { %v3937_v16 = vadd.f32 %v3936_v31, %v3935_v25  ;;  %v1756_v40 = vadd.f32 %v3934_v24, %v3543_v23  ;;  %v4248_v17 = vpop.f32.mrb[34].mxu0 }
 0x68f   :  { %v1807_v21 = vpop.f32.mrb[35].mxu0 }
 0x690   :  { %v1805_v41 = vadd.f32 %v1804_v35, %v1756_v40  ;;  %v1759_v42 = vadd.f32 %v3937_v16, %v3543_v23 }
 0x692   :  { %v1808_v26 = vadd.f32 %v1807_v21, %v1759_v42  ;;  %v3938_v43 = vpop.f32.mrb[20].mxu1  ;;  %v1819_v45 = vmax.f32 %v1805_v41, 0.0 }
 0x693   :  { %v3939_v44 = vpop.f32.mrb[21].mxu1 }
 0x694   :  { %v1820_v46 = vmax.f32 %v1808_v26, 0.0  ;;  %v3940_v47 = vadd.f32 %v3939_v44, %v3938_v43  ;;  %v3941_v48 = vpop.f32.mrb[22].mxu1 }
 0x695   :  { %v3942_v38 = vpop.f32.mrb[23].mxu1 }
 0x696   :  { %v1823_v49 = vpack.c.bf16 %v1820_v46, %v1819_v45  ;;  %v1764_v50 = vadd.f32 %v3940_v47, %v3543_v23  ;;  %v3943_v51 = vadd.f32 %v3942_v38, %v3941_v48 }
 0x698   :  { %v1813_v52 = vadd.f32 %v4247_v27, %v1764_v50  ;;  %v1767_v53 = vadd.f32 %v3943_v51, %v3543_v23  ;;  %4265 = vmatprep.mubr.bf16.mxu1 %v1823_v49 }
 0x69a   :  { %v1816_v54 = vadd.f32 %v4248_v17, %v1767_v53  ;;  %v1821_v55 = vmax.f32 %v1813_v52, 0.0 }
 0x69c   :  { %v1822_v56 = vmax.f32 %v1816_v54, 0.0 }
 0x69e   :  { %v1824_v57 = vpack.c.bf16 %v1822_v56, %v1821_v55 }
 0x6a0   :  { %4266 = vmatmul.mubr.bf16.vlgmr.msra.gmra.mrb[24].mxu1 %v1824_v57 }
 0x6a1   :  { %4270 = vmatpush3.bf16.msra.mxu1 %v4539_v7  ;;  %v4557_v7 = vld [vmem:[%s5526_s1 + $0x3b0] sm:$0xff]  }
 0x6a2   :  { %4271 = vmatprep.subr.bf16.mxu1 %v4542_v58 }
 0x6a5   :  { %4272 = vmatpush3.bf16.msra.mxu1 %v4542_v58 }
 0x6a6   :  { %4273 = vmatprep.subr.bf16.mxu1 %v4545_v59 }
 0x6a9   :  { %4274 = vmatpush3.bf16.msra.mxu1 %v4545_v59 }
 0x6aa   :  { %4275 = vmatprep.subr.bf16.mxu1 %v4548_v60 }
 0x6ad   :  { %4276 = vmatpush3.bf16.msra.mxu1 %v4548_v60 }
 0x6ae   :  { %4277 = vmatprep.subr.bf16.mxu1 %v4551_v0 }
 0x6b1   :  { %4278 = vmatpush3.bf16.msra.mxu1 %v4551_v0  ;;  %v4562_v0 = vld [vmem:[#allocation2 + $0x108] sm:$0xff]  }
 0x6b2   :  { %4279 = vmatprep.subr.bf16.mxu1 %v4554_v3 }
 0x6b5   :  { %4280 = vmatpush3.bf16.msra.mxu1 %v4554_v3  ;;  %v4564_v3 = vld [vmem:[#allocation2 + $0x118] sm:$0xff]  }
 0x6b6   :  { %4281 = vmatprep.subr.bf16.mxu1 %v4557_v7 }
 0x6b9   :  { %4282 = vmatpush3.bf16.msra.mxu1 %v4557_v7  ;;  %v4567_v7 = vld [vmem:[#allocation2 + $0x130] sm:$0xff]  }
 0x6ba   :  { %4283 = vmatprep.subr.bf16.mxu1 %v4560_v11 }
 0x6bd   :  { %4284 = vmatpush3.bf16.msra.mxu1 %v4560_v11  ;;  %v4570_v11 = vld [vmem:[%s5526_s1 + $0x3c0] sm:$0xff]  }
 0x6be   :  { %4012 = vmatprep.subr.bf16.mxu1 %v4569_v10  ;;  %v4591_v10 = vld [vmem:[%s5526_s1 + $0x3f8] sm:$0xff]  }
 0x773   :  { %v4267_v14 = vpop.f32.mrb[24].mxu1 }
 0x774   :  { %v1941_v15 = vadd.f32 %v4267_v14, %v3569_v13  ;;  %v1932_v19 = vpop.f32.mrb[25].mxu1  ;;  %v4573_v14 = vld [vmem:[%s5526_s1 + $0x3c8] sm:$0xff]  }
 0x775   :  { %v1933_v23 = vadd.f32 %v3569_v13, %v1932_v19  ;;  %v4268_v24 = vpop.f32.mrb[26].mxu1  ;;  %v4576_v19 = vld [vmem:[%s5526_s1 + $0x3d0] sm:$0xff]  }
 0x776   :  { %v1949_v25 = vadd.f32 %v1941_v15, %v5249_v29  ;;  %v1944_v27 = vadd.f32 %v4268_v24, %v3569_v13  ;;  %v1935_v31 = vpop.f32.mrb[27].mxu1  ;;  %v4575_v15 = vld [vmem:[%s5526_s1 + $0x410] sm:$0xff]   ;;  %v4579_v24 = vld [vmem:[%s5526_s1 + $0x3d8] sm:$0xff]  }
 0x777   :  { %v1947_v35 = vadd.f32 %v1933_v23, %v5251_v30  ;;  %v1936_v16 = vadd.f32 %v3569_v13, %v1935_v31  ;;  %v4572_v13 = vld [vmem:[%s5526_s1 + $0x408] sm:$0xff]   ;;  %v4578_v23 = vld [vmem:[%s5526_s1 + $0x418] sm:$0xff]  }
 0x778   :  { %v1953_v40 = vmax.f32 %v1949_v25, 0.0  ;;  %v1950_v17 = vadd.f32 %v1944_v27, %v5254_v32  ;;  %v4581_v25 = vld [vmem:[%s5526_s1 + $0x420] sm:$0xff]  }
 0x779   :  { %v1951_v21 = vmax.f32 %v1947_v35, 0.0  ;;  %v1948_v41 = vadd.f32 %v1936_v16, %v5257_v39  ;;  %v4582_v27 = vld [vmem:[%s5526_s1 + $0x3e0] sm:$0xff]   ;;  %v3627_v16 = vld [vmem:[%s5528_s3 + $0x8] ss:$0 sm:$0xff] }
 0x77a   :  { %v1954_v42 = vmax.f32 %v1950_v17, 0.0  ;;  %v1957_v26 = vrot.slane %v1953_v40, 7  ;;  %v1969_v46 = vrot.slane %v1953_v40, 1 }
 0x77b   :  { %v1955_v43 = vrot.slane %v1951_v21, 7  ;;  %v1967_v44 = vrot.slane %v1951_v21, 1  ;;  %v1952_v45 = vmax.f32 %v1948_v41, 0.0 }
 0x77c   :  { %v1958_v47 = vrot.slane %v1954_v42, 7  ;;  %v1970_v48 = vrot.slane %v1954_v42, 1  ;;  %v1983_v29 = vpack.c.bf16 %v1954_v42, %v1953_v40 }
 0x77d   :  { %v1956_v38 = vrot.slane %v1952_v45, 7  ;;  %v1968_v49 = vrot.slane %v1952_v45, 1  ;;  %v1980_v50 = vpack.c.bf16 %v1952_v45, %v1951_v21 }
 0x77e   :  { %v1962_v30 = vsel %vm112_vm0, %v1958_v47, %v1955_v43  ;;  %v1971_v32 = vsel %vm125_vm4, %v1969_v46, %v1970_v48  ;;  %v1974_v39 = vsel %vm125_vm4, %v1970_v48, %v1967_v44  ;;  %v1959_v51 = vsel %vm112_vm0, %v1957_v26, %v1958_v47 }
 0x77f   :  { %2218 = vmatprep.mubr.bf16.mxu0 %v1980_v50  ;;  %v1961_v52 = vsel %vm112_vm0, %v1955_v43, %v1956_v38  ;;  %v1963_v53 = vmul.f32 %v4904_v34, %v1962_v30  ;;  %v1972_v54 = vsel %vm125_vm4, %v1968_v49, %v1969_v46  ;;  %v1973_v55 = vsel %vm125_vm4, %v1967_v44, %v1968_v49 }
 0x780   :  { %v1976_v56 = vmul.f32 %v4912_v36, %v1972_v54  ;;  %v1978_v57 = vmul.f32 %v4915_v37, %v1974_v39  ;;  %v1960_v58 = vsel %vm112_vm0, %v1956_v38, %v1957_v26 }
 0x781   :  { %v1979_v59 = vpack.c.bf16 %v1961_v52, %v1963_v53  ;;  %v1965_v60 = vmul.f32 %v4951_v62, %v1960_v58 }
 0x782   :  { %v1981_v61 = vpack.c.bf16 %v1976_v56, %v1973_v55  ;;  %v1984_v63 = vpack.c.bf16 %v1978_v57, %v1971_v32 }
 0x783   :  { %2219 = vmatmul.mubr.bf16.vlgmr.msra.gmra.mrb[36].mxu0 %v1979_v59  ;;  %v1982_v1 = vpack.c.bf16 %v1959_v51, %v1965_v60  ;;  %v4574_v60 = vld [vmem:[%s5526_s1 + $0x448] sm:$0xff]  }
 0x784   :  { %2226 = vmatprep.mubr.bf16.mxu0 %v1983_v29  ;;  %4285 = vmatprep.mubr.bf16.mxu1 %v1981_v61  ;;  %v4577_v61 = vld [vmem:[%s5526_s1 + $0x450] sm:$0xff]  }
 0x785   :  { %4286 = vmatmul.mubr.bf16.vlgmr.msra.gmra.mrb[28].mxu1 %v1984_v63  ;;  %4290 = vmatpush3.bf16.msra.mxu0 %v4561_v12  ;;  %v4571_v12 = vld [vmem:[%s5526_s1 + $0x440] sm:$0xff]   ;;  %v4580_v63 = vld [vmem:[%s5526_s1 + $0x458] sm:$0xff]  }
 0x786   :  { %4291 = vmatprep.subr.bf16.mxu0 %v4562_v0  ;;  %4013 = vmatpush3.bf16.msra.mxu1 %v4570_v11  ;;  %v4592_v11 = vld [vmem:[%s5526_s1 + $0x478] sm:$0xff]  }
 0x787   :  { %4014 = vmatprep.subr.bf16.mxu1 %v4572_v13  ;;  %v3653_v13 = vld [vmem:[%s5528_s3 + $0x9] ss:$0 sm:$0xff] }
 0x789   :  { %4292 = vmatpush3.bf16.msra.mxu0 %v4562_v0  ;;  %v4583_v0 = vld [vmem:[%s5526_s1 + $0x460] sm:$0xff]  }
 0x78a   :  { %4293 = vmatprep.subr.bf16.mxu0 %v4563_v2  ;;  %4015 = vmatpush3.bf16.msra.mxu1 %v4573_v14 }
 0x78b   :  { %2227 = vmatmul.mubr.bf16.gmra.mrb[40].mxu0 %v1982_v1  ;;  %4016 = vmatprep.subr.bf16.mxu1 %v4575_v15  ;;  %v4584_v1 = vld [vmem:[%s5526_s1 + $0x428] sm:$0xff]  }
 0x78d   :  { %4294 = vmatpush3.bf16.msra.mxu0 %v4563_v2  ;;  %v4585_v2 = vld [vmem:[%s5526_s1 + $0x3e8] sm:$0xff]  }
 0x78e   :  { %4295 = vmatprep.subr.bf16.mxu0 %v4564_v3  ;;  %4017 = vmatpush3.bf16.msra.mxu1 %v4576_v19 }
 0x78f   :  { %4018 = vmatprep.subr.bf16.mxu1 %v4578_v23 }
 0x791   :  { %4296 = vmatpush3.bf16.msra.mxu0 %v4564_v3  ;;  %v4586_v3 = vld [vmem:[%s5526_s1 + $0x468] sm:$0xff]  }
 0x792   :  { %4297 = vmatprep.subr.bf16.mxu0 %v4565_v5  ;;  %4019 = vmatpush3.bf16.msra.mxu1 %v4579_v24 }
 0x793   :  { %4020 = vmatprep.subr.bf16.mxu1 %v4581_v25 }
 0x795   :  { %4298 = vmatpush3.bf16.msra.mxu0 %v4565_v5  ;;  %v4587_v5 = vld [vmem:[%s5526_s1 + $0x430] sm:$0xff]  }
 0x796   :  { %4299 = vmatprep.subr.bf16.mxu0 %v4566_v6  ;;  %4021 = vmatpush3.bf16.msra.mxu1 %v4582_v27 }
 0x797   :  { %4022 = vmatprep.subr.bf16.mxu1 %v4584_v1  ;;  %v3711_v1 = vld [vmem:[%s5528_s3 + $0xa] ss:$0 sm:$0xff] }
 0x799   :  { %4300 = vmatpush3.bf16.msra.mxu0 %v4566_v6  ;;  %v4588_v6 = vld [vmem:[%s5526_s1 + $0x3f0] sm:$0xff]  }
 0x79a   :  { %4301 = vmatprep.subr.bf16.mxu0 %v4567_v7  ;;  %4023 = vmatpush3.bf16.msra.mxu1 %v4585_v2 }
 0x79b   :  { %4024 = vmatprep.subr.bf16.mxu1 %v4587_v5 }
 0x79d   :  { %4302 = vmatpush3.bf16.msra.mxu0 %v4567_v7  ;;  %v4589_v7 = vld [vmem:[%s5526_s1 + $0x470] sm:$0xff]  }
 0x79e   :  { %4303 = vmatprep.subr.bf16.mxu0 %v4568_v8  ;;  %4025 = vmatpush3.bf16.msra.mxu1 %v4588_v6 }
 0x7a1   :  { %4304 = vmatpush3.bf16.msra.mxu0 %v4568_v8  ;;  %v4590_v8 = vld [vmem:[%s5526_s1 + $0x438] sm:$0xff]  }
 0x7a2   :  { %4309 = vmatprep.subr.bf16.mxu0 %v4571_v12  ;;  %4026 = vmatprep.subr.bf16.mxu1 %v4590_v8 }
 0x7a3   :  { %4027 = vmatpush3.bf16.msra.mxu1 %v4591_v10 }
 0x856   :  { %v3980_v31 = vpop.f32.mrb[36].mxu0 }
 0x857   :  { %v3981_v35 = vpop.f32.mrb[37].mxu0 }
 0x858   :  { %v3982_v40 = vadd.f32 %v3981_v35, %v3980_v31  ;;  %v3983_v17 = vpop.f32.mrb[38].mxu0  ;;  %v4287_v21 = vpop.f32.mrb[28].mxu1 }
 0x859   :  { %v3984_v41 = vpop.f32.mrb[39].mxu0  ;;  %v2269_v42 = vpop.f32.mrb[29].mxu1 }
 0x85a   :  { %v3985_v26 = vadd.f32 %v3984_v41, %v3983_v17  ;;  %v2221_v43 = vadd.f32 %v3982_v40, %v3627_v16  ;;  %v4288_v44 = vpop.f32.mrb[30].mxu1 }
 0x85b   :  { %v2272_v45 = vpop.f32.mrb[31].mxu1 }
 0x85c   :  { %v2270_v46 = vadd.f32 %v2269_v42, %v2221_v43  ;;  %v2224_v47 = vadd.f32 %v3985_v26, %v3627_v16 }
 0x85e   :  { %v2273_v48 = vadd.f32 %v2272_v45, %v2224_v47  ;;  %v3986_v29 = vpop.f32.mrb[40].mxu0  ;;  %v2284_v49 = vmax.f32 %v2270_v46, 0.0 }
 0x85f   :  { %v3987_v38 = vpop.f32.mrb[41].mxu0 }
 0x860   :  { %v2285_v50 = vmax.f32 %v2273_v48, 0.0  ;;  %v3988_v30 = vadd.f32 %v3987_v38, %v3986_v29  ;;  %v3989_v32 = vpop.f32.mrb[42].mxu0 }
 0x861   :  { %v3990_v39 = vpop.f32.mrb[43].mxu0 }
 0x862   :  { %v2288_v51 = vpack.c.bf16 %v2285_v50, %v2284_v49  ;;  %v2229_v52 = vadd.f32 %v3988_v30, %v3627_v16  ;;  %v3991_v53 = vadd.f32 %v3990_v39, %v3989_v32 }
 0x864   :  { %v2278_v54 = vadd.f32 %v4287_v21, %v2229_v52  ;;  %v2232_v55 = vadd.f32 %v3991_v53, %v3627_v16  ;;  %4305 = vmatprep.mubr.bf16.mxu0 %v2288_v51 }
 0x866   :  { %v2281_v56 = vadd.f32 %v4288_v44, %v2232_v55  ;;  %v2286_v57 = vmax.f32 %v2278_v54, 0.0 }
 0x868   :  { %v2287_v58 = vmax.f32 %v2281_v56, 0.0 }
 0x86a   :  { %v2289_v59 = vpack.c.bf16 %v2287_v58, %v2286_v57 }
 0x86c   :  { %4306 = vmatmul.mubr.bf16.vlgmr.msra.gmra.mrb[44].mxu0 %v2289_v59  ;;  %v4594_v59 = vld [vmem:[#allocation2 + $0x148] sm:$0xff]  }
 0x86d   :  { %4310 = vmatpush3.bf16.msra.mxu0 %v4571_v12  ;;  %v4593_v12 = vld [vmem:[#allocation2 + $0x140] sm:$0xff]  }
 0x86e   :  { %4311 = vmatprep.subr.bf16.mxu0 %v4574_v60  ;;  %4329 = vmatprep.subr.bf16.mxu1 %v4593_v12 }
 0x871   :  { %4312 = vmatpush3.bf16.msra.mxu0 %v4574_v60  ;;  %v4595_v60 = vld [vmem:[#allocation2 + $0x150] sm:$0xff]  }
 0x872   :  { %4313 = vmatprep.subr.bf16.mxu0 %v4577_v61 }
 0x875   :  { %4314 = vmatpush3.bf16.msra.mxu0 %v4577_v61  ;;  %v4600_v61 = vld [vmem:[#allocation2 + $0x178] sm:$0xff]  }
 0x876   :  { %4315 = vmatprep.subr.bf16.mxu0 %v4580_v63 }
 0x879   :  { %4316 = vmatpush3.bf16.msra.mxu0 %v4580_v63 }
 0x87a   :  { %4317 = vmatprep.subr.bf16.mxu0 %v4583_v0 }
 0x87d   :  { %4318 = vmatpush3.bf16.msra.mxu0 %v4583_v0 }
 0x87e   :  { %4319 = vmatprep.subr.bf16.mxu0 %v4586_v3 }
 0x881   :  { %4320 = vmatpush3.bf16.msra.mxu0 %v4586_v3 }
 0x882   :  { %4321 = vmatprep.subr.bf16.mxu0 %v4589_v7 }
 0x885   :  { %4322 = vmatpush3.bf16.msra.mxu0 %v4589_v7 }
 0x886   :  { %4323 = vmatprep.subr.bf16.mxu0 %v4592_v11 }
 0x889   :  { %4324 = vmatpush3.bf16.msra.mxu0 %v4592_v11 }
 0x93f   :  { %v4307_v14 = vpop.f32.mrb[44].mxu0 }
 0x940   :  { %v2406_v15 = vadd.f32 %v4307_v14, %v3653_v13  ;;  %v2397_v19 = vpop.f32.mrb[45].mxu0 }
 0x941   :  { %v2398_v23 = vadd.f32 %v3653_v13, %v2397_v19  ;;  %v4308_v24 = vpop.f32.mrb[46].mxu0 }
 0x942   :  { %v2414_v25 = vmax.f32 %v2406_v15, 0.0  ;;  %v2409_v27 = vadd.f32 %v4308_v24, %v3653_v13  ;;  %v2400_v31 = vpop.f32.mrb[47].mxu0 }
 0x943   :  { %v2412_v35 = vmax.f32 %v2398_v23, 0.0  ;;  %v2401_v16 = vadd.f32 %v3653_v13, %v2400_v31 }
 0x944   :  { %v2415_v40 = vmax.f32 %v2409_v27, 0.0  ;;  %v2418_v17 = vrot.slane %v2414_v25, 7  ;;  %v2430_v26 = vrot.slane %v2414_v25, 1 }
 0x945   :  { %v2416_v21 = vrot.slane %v2412_v35, 7  ;;  %v2428_v41 = vrot.slane %v2412_v35, 1  ;;  %v2413_v42 = vmax.f32 %v2401_v16, 0.0 }
 0x946   :  { %v2419_v43 = vrot.slane %v2415_v40, 7  ;;  %v2431_v44 = vrot.slane %v2415_v40, 1  ;;  %v2444_v45 = vpack.c.bf16 %v2415_v40, %v2414_v25 }
 0x947   :  { %v2417_v46 = vrot.slane %v2413_v42, 7  ;;  %v2429_v47 = vrot.slane %v2413_v42, 1  ;;  %v2441_v48 = vpack.c.bf16 %v2413_v42, %v2412_v35 }
 0x948   :  { %v2423_v29 = vsel %vm112_vm0, %v2419_v43, %v2416_v21  ;;  %v2435_v38 = vsel %vm125_vm4, %v2431_v44, %v2428_v41  ;;  %v2432_v49 = vsel %vm125_vm4, %v2430_v26, %v2431_v44  ;;  %v2420_v50 = vsel %vm112_vm0, %v2418_v17, %v2419_v43 }
 0x949   :  { %2679 = vmatprep.mubr.bf16.mxu1 %v2441_v48  ;;  %v2422_v30 = vsel %vm112_vm0, %v2416_v21, %v2417_v46  ;;  %v2424_v32 = vmul.f32 %v4904_v34, %v2423_v29  ;;  %v2433_v39 = vsel %vm125_vm4, %v2429_v47, %v2430_v26  ;;  %v2434_v51 = vsel %vm125_vm4, %v2428_v41, %v2429_v47  ;;  %v4606_v47 = vld [vmem:[#allocation4 + $0x14] ss:$8 sps:$4 sm:$0xff]   ;;  %v4604_v48 = vld [vmem:[#allocation4 + $0x10] ss:$8 sps:$4 sm:$0xff]   ;;  %v4609_v29 = vld [vmem:[#allocation4 + $0x24] ss:$8 sps:$4 sm:$0xff]  }
 0x94a   :  { %v2437_v52 = vmul.f32 %v4912_v36, %v2433_v39  ;;  %v2439_v53 = vmul.f32 %v4915_v37, %v2435_v38  ;;  %v2421_v54 = vsel %vm112_vm0, %v2417_v46, %v2418_v17  ;;  %v4597_v36 = vld [vmem:[#allocation2 + $0x160] sm:$0xff]   ;;  %v4598_v37 = vld [vmem:[#allocation2 + $0x168] sm:$0xff]   ;;  %v4616_v39 = vld [vmem:[#allocation4 + $0x50] ss:$8 sps:$4 sm:$0xff]  }
 0x94b   :  { %v2440_v55 = vpack.c.bf16 %v2422_v30, %v2424_v32  ;;  %v2426_v56 = vmul.f32 %v4951_v62, %v2421_v54  ;;  %v4599_v62 = vld [vmem:[#allocation2 + $0x170] sm:$0xff]   ;;  %v4601_v46 = vld [vmem:[#allocation4] ss:$8 sps:$4 sm:$0xff]   ;;  %v4615_v30 = vld [vmem:[#allocation4 + $0x44] ss:$8 sps:$4 sm:$0xff]  }
 0x94c   :  { %v2442_v57 = vpack.c.bf16 %v2437_v52, %v2434_v51  ;;  %v2445_v58 = vpack.c.bf16 %v2439_v53, %v2432_v49  ;;  %v4607_v38 = vld [vmem:[#allocation4 + $0x20] ss:$8 sps:$4 sm:$0xff]   ;;  %v4612_v49 = vld [vmem:[#allocation4 + $0x34] ss:$8 sps:$4 sm:$0xff]   ;;  %v4621_v52 = vld [vmem:[#allocation4 + $0x64] ss:$8 sps:$4 sm:$0xff]  }
 0x94d   :  { %2680 = vmatmul.mubr.bf16.vlgmr.msra.gmra.mrb[32].mxu1 %v2440_v55  ;;  %v2443_v34 = vpack.c.bf16 %v2420_v50, %v2426_v56  ;;  %v4610_v50 = vld [vmem:[#allocation4 + $0x30] ss:$8 sps:$4 sm:$0xff]   ;;  %v4613_v32 = vld [vmem:[#allocation4 + $0x40] ss:$8 sps:$4 sm:$0xff]   ;;  %v4618_v51 = vld [vmem:[#allocation4 + $0x54] ss:$8 sps:$4 sm:$0xff]  }
 0x94e   :  { %2687 = vmatprep.mubr.bf16.mxu1 %v2444_v45  ;;  %4325 = vmatprep.mubr.bf16.mxu0 %v2442_v57  ;;  %v4603_v45 = vld [vmem:[#allocation4 + $0x4] ss:$8 sps:$4 sm:$0xff]   ;;  %v4719_v53 = vmov 0   ;;  %v4619_v54 = vld [vmem:[#allocation4 + $0x60] ss:$8 sps:$4 sm:$0xff]  }
 0x94f   :  { %4326 = vmatmul.mubr.bf16.vlgmr.msra.gmra.mrb[48].mxu0 %v2445_v58  ;;  %4330 = vmatpush3.bf16.msra.mxu1 %v4593_v12  ;;  %v4624_v55 = vld [vmem:[#allocation4 + $0x74] ss:$8 sps:$4 sm:$0xff]   ;;  %v4622_v56 = vld [vmem:[#allocation4 + $0x70] ss:$8 sps:$4 sm:$0xff]   ;;  %v3097_v57 = vld [vmem:[#allocation6 + $0x80] sm:$0xff] }
 0x950   :  { %4331 = vmatprep.subr.bf16.mxu1 %v4594_v59  ;;  %2991 = vmatprep.subr.bf16.mxu0 %v4603_v45  ;;  %v3098_v58 = vld [vmem:[#allocation6 + $0x88] sm:$0xff] }
 0x951   :  { %2992 = vmatpush1.bf16.msra.mxu0 %v4601_v46  ;;  %3023 = vmatprep.mubr.bf16.mxu0 %v4719_v53  ;;  %v3737_v46 = vld [vmem:[%s5528_s3 + $0xb] ss:$0 sm:$0xff] }
 0x952   :  { %2993 = vmatprep.subr.bf16.mxu0 %v4606_v47 }
 0x953   :  { %4332 = vmatpush3.bf16.msra.mxu1 %v4594_v59  ;;  %v3081_v59 = vld [vmem:[#allocation6] sm:$0xff] }
 0x954   :  { %4333 = vmatprep.subr.bf16.mxu1 %v4595_v60 }
 0x955   :  { %2688 = vmatmul.mubr.bf16.gmra.mrb[36].mxu1 %v2443_v34  ;;  %2994 = vmatpush1.bf16.msra.mxu0 %v4604_v48  ;;  %v4360_v34 = vpack.c.bf16 %v3098_v58, %v3097_v57 }
 0x956   :  { %2995 = vmatprep.subr.bf16.mxu0 %v4609_v29 }
 0x957   :  { %4334 = vmatpush3.bf16.msra.mxu1 %v4595_v60  ;;  %v3082_v60 = vld [vmem:[#allocation6 + $0x8] sm:$0xff] }
 0x958   :  { %4335 = vmatprep.subr.bf16.mxu1 %v4596_v9 }
 0x959   :  { %2996 = vmatpush1.bf16.msra.mxu0 %v4607_v38 }
 0x95a   :  { %2997 = vmatprep.subr.bf16.mxu0 %v4612_v49 }
 0x95b   :  { %4336 = vmatpush3.bf16.msra.mxu1 %v4596_v9  ;;  %v3099_v9 = vld [vmem:[#allocation6 + $0x90] sm:$0xff] }
 0x95c   :  { %4337 = vmatprep.subr.bf16.mxu1 %v4597_v36 }
 0x95d   :  { %2998 = vmatpush1.bf16.msra.mxu0 %v4610_v50 }
 0x95e   :  { %2999 = vmatprep.subr.bf16.mxu0 %v4615_v30 }
 0x95f   :  { %4338 = vmatpush3.bf16.msra.mxu1 %v4597_v36  ;;  %v3100_v36 = vld [vmem:[#allocation6 + $0x98] sm:$0xff] }
 0x960   :  { %4339 = vmatprep.subr.bf16.mxu1 %v4598_v37 }
 0x961   :  { %3000 = vmatpush1.bf16.msra.mxu0 %v4613_v32 }
 0x962   :  { %3001 = vmatprep.subr.bf16.mxu0 %v4618_v51 }
 0x963   :  { %4340 = vmatpush3.bf16.msra.mxu1 %v4598_v37  ;;  %v4362_v37 = vpack.c.bf16 %v3082_v60, %v3081_v59 }
 0x964   :  { %4341 = vmatprep.subr.bf16.mxu1 %v4599_v62 }
 0x965   :  { %3002 = vmatpush1.bf16.msra.mxu0 %v4616_v39 }
 0x966   :  { %3003 = vmatprep.subr.bf16.mxu0 %v4621_v52 }
 0x967   :  { %4342 = vmatpush3.bf16.msra.mxu1 %v4599_v62  ;;  %v4364_v62 = vpack.c.bf16 %v3100_v36, %v3099_v9 }
 0x968   :  { %4343 = vmatprep.subr.bf16.mxu1 %v4600_v61 }
 0x969   :  { %3004 = vmatpush1.bf16.msra.mxu0 %v4619_v54 }
 0x96a   :  { %3005 = vmatprep.subr.bf16.mxu0 %v4624_v55 }
 0x96b   :  { %4344 = vmatpush3.bf16.msra.mxu1 %v4600_v61  ;;  %v3083_v61 = vld [vmem:[#allocation6 + $0x10] sm:$0xff] }
 0x96c   :  { %4361 = vmatprep.subr.bf16.mxu1 %v4360_v34 }
 0x96d   :  { %3006 = vmatpush1.bf16.msra.mxu0 %v4622_v56 }
 0xa20   :  { %v4028_v63 = vpop.f32.mrb[32].mxu1 }
 0xa21   :  { %v4029_v0 = vpop.f32.mrb[33].mxu1 }
 0xa22   :  { %v4030_v2 = vadd.f32 %v4029_v0, %v4028_v63  ;;  %v4031_v3 = vpop.f32.mrb[34].mxu1  ;;  %v4327_v5 = vpop.f32.mrb[48].mxu0  ;;  %v3084_v63 = vld [vmem:[#allocation6 + $0x18] sm:$0xff]  ;;  %v3101_v0 = vld [vmem:[#allocation6 + $0xa0] sm:$0xff] }
 0xa23   :  { %v4032_v6 = vpop.f32.mrb[35].mxu1  ;;  %v2730_v7 = vpop.f32.mrb[49].mxu0 }
 0xa24   :  { %v4033_v8 = vadd.f32 %v4032_v6, %v4031_v3  ;;  %v2682_v10 = vadd.f32 %v4030_v2, %v3711_v1  ;;  %v4328_v11 = vpop.f32.mrb[50].mxu0  ;;  %v4366_v2 = vpack.c.bf16 %v3084_v63, %v3083_v61  ;;  %v3086_v6 = vld [vmem:[#allocation6 + $0x28] sm:$0xff] }
 0xa25   :  { %v2733_v12 = vpop.f32.mrb[51].mxu0 }
 0xa26   :  { %v2731_v13 = vadd.f32 %v2730_v7, %v2682_v10  ;;  %v2685_v14 = vadd.f32 %v4033_v8, %v3711_v1  ;;  %v3103_v7 = vld [vmem:[#allocation6 + $0xb0] sm:$0xff]  ;;  %v3104_v8 = vld [vmem:[#allocation6 + $0xb8] sm:$0xff] }
 0xa28   :  { %v2734_v15 = vadd.f32 %v2733_v12, %v2685_v14  ;;  %v4034_v19 = vpop.f32.mrb[36].mxu1  ;;  %v2745_v24 = vmax.f32 %v2731_v13, 0.0  ;;  %v3087_v12 = vld [vmem:[#allocation6 + $0x30] sm:$0xff]  ;;  %v3088_v13 = vld [vmem:[#allocation6 + $0x38] sm:$0xff]  ;;  %v3105_v14 = vld [vmem:[#allocation6 + $0xc0] sm:$0xff] }
 0xa29   :  { %v4035_v23 = vpop.f32.mrb[37].mxu1 }
 0xa2a   :  { %v2746_v25 = vmax.f32 %v2734_v15, 0.0  ;;  %v4036_v27 = vadd.f32 %v4035_v23, %v4034_v19  ;;  %v4037_v31 = vpop.f32.mrb[38].mxu1  ;;  %v3106_v15 = vld [vmem:[#allocation6 + $0xc8] sm:$0xff]  ;;  %v4374_v19 = vpack.c.bf16 %v3088_v13, %v3087_v12  ;;  %v3045_v13 = vand.u32 127, %v71_v4 }
 0xa2b   :  { %v4038_v35 = vpop.f32.mrb[39].mxu1  ;;  %v4376_v23 = vpack.c.bf16 %v3106_v15, %v3105_v14 }
 0xa2c   :  { %v2749_v16 = vpack.c.bf16 %v2746_v25, %v2745_v24  ;;  %v2690_v40 = vadd.f32 %v4036_v27, %v3711_v1  ;;  %v4039_v17 = vadd.f32 %v4038_v35, %v4037_v31  ;;  %v3089_v24 = vld [vmem:[#allocation6 + $0x40] sm:$0xff]  ;;  %v3090_v25 = vld [vmem:[#allocation6 + $0x48] sm:$0xff]  ;;  %v3107_v27 = vld [vmem:[#allocation6 + $0xd0] sm:$0xff]  ;;  %v3046_v14 = vadd.s32 128, %v3045_v13 }
 0xa2d   :  { %v3108_v31 = vld [vmem:[#allocation6 + $0xd8] sm:$0xff]  ;;  %v4378_v35 = vpack.c.bf16 %v3090_v25, %v3089_v24 }
 0xa2e   :  { %v2739_v21 = vadd.f32 %v4327_v5, %v2690_v40  ;;  %v2693_v41 = vadd.f32 %v4039_v17, %v3711_v1  ;;  %4345 = vmatprep.mubr.bf16.mxu1 %v2749_v16  ;;  %v3102_v1 = vld [vmem:[#allocation6 + $0xa8] sm:$0xff]  ;;  %v3085_v5 = vld [vmem:[#allocation6 + $0x20] sm:$0xff]  ;;  %v4380_v16 = vpack.c.bf16 %v3108_v31, %v3107_v27  ;;  %v3091_v40 = vld [vmem:[#allocation6 + $0x50] sm:$0xff]  ;;  %v3048_v15 = vshra.s32 %v3046_v14, 4 }
 0xa2f   :  { %v4368_v3 = vpack.c.bf16 %v3102_v1, %v3101_v0  ;;  %v4370_v10 = vpack.c.bf16 %v3086_v6, %v3085_v5  ;;  %v3092_v17 = vld [vmem:[#allocation6 + $0x58] sm:$0xff]  ;;  %v3111_v6 = vld [vmem:[#allocation6 + $0xf0] sm:$0xff] }
 0xa30   :  { %v2742_v42 = vadd.f32 %v4328_v11, %v2693_v41  ;;  %v2747_v26 = vmax.f32 %v2739_v21, 0.0  ;;  %v4372_v11 = vpack.c.bf16 %v3104_v8, %v3103_v7  ;;  %v3109_v21 = vld [vmem:[#allocation6 + $0xe0] sm:$0xff]  ;;  %v3110_v41 = vld [vmem:[#allocation6 + $0xe8] sm:$0xff]  ;;  %v3112_v7 = vld [vmem:[#allocation6 + $0xf8] sm:$0xff]  ;;  %vm3050_vm6 = vcmp.eq.s32.totalorder %v3048_v15, %v4857_v18 }
 0xa31   :  { %v4388_v8 = vpack.c.bf16 %v3112_v7, %v3111_v6  ;;  %vm3052_vm8 = vcmp.eq.s32.totalorder %v3048_v15, %v4862_v20  ;;  %vm3054_vm10 = vcmp.eq.s32.totalorder %v3048_v15, %v4886_v28  ;;  %vm3056_vm12 = vcmp.eq.s32.totalorder %v3048_v15, %v4867_v22 }
 0xa32   :  { %v2748_v43 = vmax.f32 %v2742_v42, 0.0  ;;  %v4382_v42 = vpack.c.bf16 %v3092_v17, %v3091_v40  ;;  %v3765_v27 = vsel %vm3052_vm8, 1.0, %v4718_v33 }
 0xa34   :  { %v2750_v44 = vpack.c.bf16 %v2748_v43, %v2747_v26  ;;  %v4384_v26 = vpack.c.bf16 %v3110_v41, %v3109_v21  ;;  %v3093_v43 = vld [vmem:[#allocation6 + $0x60] sm:$0xff] }
 0xa36   :  { %4346 = vmatmul.mubr.bf16.vlgmr.msra.gmra.mrb[40].mxu1 %v2750_v44  ;;  %v3094_v44 = vld [vmem:[#allocation6 + $0x68] sm:$0xff] }
 0xa37   :  { %4363 = vmatpush3.bf16.msra.mxu1 %v4362_v37  ;;  %v4386_v45 = vpack.c.bf16 %v3094_v44, %v3093_v43 }
 0xa38   :  { %4365 = vmatprep.subr.bf16.mxu1 %v4364_v62 }
 0xa3b   :  { %4367 = vmatpush3.bf16.msra.mxu1 %v4366_v2 }
 0xa3c   :  { %4369 = vmatprep.subr.bf16.mxu1 %v4368_v3 }
 0xa3f   :  { %4371 = vmatpush3.bf16.msra.mxu1 %v4370_v10  ;;  %v3095_v10 = vld [vmem:[#allocation6 + $0x70] sm:$0xff] }
 0xa40   :  { %4373 = vmatprep.subr.bf16.mxu1 %v4372_v11  ;;  %v3096_v11 = vld [vmem:[#allocation6 + $0x78] sm:$0xff] }
 0xa41   :  { %v4390_v12 = vpack.c.bf16 %v3096_v11, %v3095_v10 }
 0xa43   :  { %4375 = vmatpush3.bf16.msra.mxu1 %v4374_v19  ;;  %v3047_v19 = vshra.s32 %v3045_v13, 4 }
 0xa44   :  { %4377 = vmatprep.subr.bf16.mxu1 %v4376_v23 }
 0xa45   :  { %vm3049_vm7 = vcmp.eq.s32.totalorder %v3047_v19, %v4857_v18  ;;  %vm3051_vm9 = vcmp.eq.s32.totalorder %v3047_v19, %v4862_v20  ;;  %vm3053_vm11 = vcmp.eq.s32.totalorder %v3047_v19, %v4886_v28  ;;  %v3767_v20 = vsel %vm3054_vm10, 1.0, %v4718_v33 }
 0xa46   :  { %v3762_v24 = vsel %vm3049_vm7, 1.0, %v4718_v33  ;;  %v3764_v40 = vsel %vm3051_vm9, 1.0, %v4718_v33  ;;  %v3766_v41 = vsel %vm3053_vm11, 1.0, %v4718_v33  ;;  %vm3055_vm13 = vcmp.eq.s32.totalorder %v3047_v19, %v4867_v22 }
 0xa47   :  { %4379 = vmatpush3.bf16.msra.mxu1 %v4378_v35  ;;  %v3768_v28 = vsel %vm3055_vm13, 1.0, %v4718_v33 }
 0xa48   :  { %4381 = vmatprep.subr.bf16.mxu1 %v4380_v16 }
 0xa4b   :  { %4383 = vmatpush3.bf16.msra.mxu1 %v4382_v42 }
 0xa4c   :  { %4385 = vmatprep.subr.bf16.mxu1 %v4384_v26  ;;  %v3769_v26 = vsel %vm3056_vm12, 1.0, %v4718_v33 }
 0xa4f   :  { %4387 = vmatpush3.bf16.msra.mxu1 %v4386_v45 }
 0xa50   :  { %4389 = vmatprep.subr.bf16.mxu1 %v4388_v8 }
 0xa53   :  { %4391 = vmatpush3.bf16.msra.mxu1 %v4390_v12 }
 0xb09   :  { %v4347_v47 = vpop.f32.mrb[40].mxu1 }
 0xb0a   :  { %v2867_v48 = vadd.f32 %v4347_v47, %v3737_v46  ;;  %v2858_v29 = vpop.f32.mrb[41].mxu1 }
 0xb0b   :  { %v2859_v38 = vadd.f32 %v3737_v46, %v2858_v29  ;;  %v4348_v49 = vpop.f32.mrb[42].mxu1  ;;  %v4720_v29 = vmov 0.0|0.0  }
 0xb0c   :  { %v2875_v50 = vsub.f32 0.0, %v2867_v48  ;;  %v2870_v30 = vadd.f32 %v4348_v49, %v3737_v46  ;;  %v2861_v32 = vpop.f32.mrb[43].mxu1  ;;  %4392 = vmatprep.subr.bf16.mxu0 %v4720_v29 }
 0xb0d   :  { %v2873_v39 = vsub.f32 0.0, %v2859_v38  ;;  %v2862_v51 = vadd.f32 %v3737_v46, %v2861_v32 }
 0xb0e   :  { %v2881_v52 = vmul.f32 1.442695, %v2875_v50  ;;  %v2876_v54 = vsub.f32 0.0, %v2870_v30 }
 0xb0f   :  { %v2877_v55 = vmul.f32 1.442695, %v2873_v39  ;;  %v2874_v56 = vsub.f32 0.0, %v2862_v51 }
 0xb10   :  { %4625 = vpow2.f32 %v2881_v52  ;;  %v2883_v57 = vmul.f32 1.442695, %v2876_v54 }
 0xb11   :  { %4627 = vpow2.f32 %v2877_v55  ;;  %v2879_v58 = vmul.f32 1.442695, %v2874_v56 }
 0xb12   :  { %4629 = vpow2.f32 %v2883_v57 }
 0xb13   :  { %4631 = vpow2.f32 %v2879_v58 }
 0xb1a   :  { %v4626_v59 = vpop.eup %4625 }
 0xb1b   :  { %v4628_v34 = vpop.eup %4627  ;;  %v2887_v60 = vadd.f32 1.0, %v4626_v59  ;;  %v3770_v59 = vld [vmem:[%s5532_s7] ss:$0 sm:$0xff] }
 0xb1c   :  { %v4630_v9 = vpop.eup %4629  ;;  %v2885_v36 = vadd.f32 1.0, %v4628_v34 }
 0xb1d   :  { %v4632_v37 = vpop.eup %4631  ;;  %4633 = vrcp.f32 %v2887_v60  ;;  %v2888_v62 = vadd.f32 1.0, %v4630_v9 }
 0xb1e   :  { %4635 = vrcp.f32 %v2885_v36  ;;  %v2886_v61 = vadd.f32 1.0, %v4632_v37 }
 0xb1f   :  { %4637 = vrcp.f32 %v2888_v62 }
 0xb20   :  { %4639 = vrcp.f32 %v2886_v61 }
 0xb27   :  { %v4634_v63 = vpop.eup %4633 }
 0xb28   :  { %v4636_v0 = vpop.eup %4635 }
 0xb29   :  { %v4638_v1 = vpop.eup %4637 }
 0xb2a   :  { %v4640_v2 = vpop.eup %4639  ;;  %v2894_v3 = vpack.c.bf16 %v4638_v1, %v4634_v63 }
 0xb2b   :  { %v2893_v5 = vpack.c.bf16 %v4640_v2, %v4636_v0 }
 0xb2d   :  { %3024 = vmatmul.mubr.bf16.vlgmr.msra.gmra.mrb[52].mxu0 %v2893_v5 }
 0xb2e   :  { %3033 = vmatprep.mubr.bf16.mxu0 %v4719_v53  ;;  %v3763_v53 = vsel %vm3050_vm6, 1.0, %v4718_v33 }
 0xb35   :  { %3034 = vmatmul.mubr.bf16.gmra.mrb[56].mxu0 %v2894_v3 }
 0xb36   :  { %4357 = vmatprep.mubr.msk.f32.mxu0 %vm4721_vm14, %v4718_v33  ;;  %v3198_v33 = vld [vmem:[%s5531_s6] sm:$0xff] }
 0xc00   :  { %v3025_v23 = vpop.f32.mrb[52].mxu0 }
 0xc01   :  { %v3027_v25 = vpop.f32.mrb[53].mxu0  ;;  %v3073_v35 = vmul.f32 %v3762_v24, %v3025_v23 }
 0xc02   :  { %v3074_v4 = vmul.f32 %v3763_v53, %v3027_v25  ;;  %v3029_v31 = vpop.f32.mrb[54].mxu0 }
 0xc03   :  { %v3031_v16 = vpop.f32.mrb[55].mxu0  ;;  %v3075_v18 = vmul.f32 %v3764_v40, %v3029_v31 }
 0xc04   :  { %v3076_v17 = vmul.f32 %v3765_v27, %v3031_v16  ;;  %3177 = vmatprep.mubr.f32.mxu1 %v3074_v4 }
 0xc05   :  { %3178 = vmatmul.mubr.f32.vlgmr.msra.gmra.mrb[44].mxu1 %v3073_v35 }
 0xc06   :  { %3182 = vmatprep.mubr.f32.mxu1 %v3076_v17 }
 0xc08   :  { %v3035_v21 = vpop.f32.mrb[56].mxu0 }
 0xc09   :  { %v3037_v42 = vpop.f32.mrb[57].mxu0  ;;  %3183 = vmatmul.mubr.f32.gmra.mrb[46].mxu1 %v3075_v18  ;;  %v3077_v45 = vmul.f32 %v3766_v41, %v3035_v21 }
 0xc0a   :  { %v3078_v43 = vmul.f32 %v3767_v20, %v3037_v42  ;;  %v3039_v44 = vpop.f32.mrb[58].mxu0 }
 0xc0b   :  { %v3041_v46 = vpop.f32.mrb[59].mxu0  ;;  %v3079_v48 = vmul.f32 %v3768_v28, %v3039_v44 }
 0xc0c   :  { %v3080_v47 = vmul.f32 %v3769_v26, %v3041_v46  ;;  %3187 = vmatprep.mubr.f32.mxu1 %v3078_v43 }
 0xc0d   :  { %3188 = vmatmul.mubr.f32.gmra.mrb[48].mxu1 %v3077_v45 }
 0xc0e   :  { %3192 = vmatprep.mubr.f32.mxu1 %v3080_v47 }
 0xc11   :  { %3193 = vmatmul.mubr.f32.gmra.mrb[50].mxu1 %v3079_v48 }
 0xcd8   :  { %v4092_v22 = vpop.f32.mrb[44].mxu1 }
 0xcd9   :  { %v4093_v38 = vpop.f32.mrb[45].mxu1 }
 0xcda   :  { %v4094_v49 = vadd.f32 %v4093_v38, %v4092_v22 }
 0xcdc   :  { %v4095_v50 = vpop.f32.mrb[46].mxu1 }
 0xcdd   :  { %v4096_v30 = vpop.f32.mrb[47].mxu1 }
 0xcde   :  { %v4097_v32 = vadd.f32 %v4096_v30, %v4095_v50 }
 0xce0   :  { %v4393_v39 = vpack.c.bf16 %v4097_v32, %v4094_v49  ;;  %v4098_v51 = vpop.f32.mrb[48].mxu1 }
 0xce1   :  { %v4099_v52 = vpop.f32.mrb[49].mxu1 }
 0xce2   :  { %v4100_v54 = vadd.f32 %v4099_v52, %v4098_v51  ;;  %4394 = vmatpush3.bf16.msra.mxu0 %v4393_v39 }
 0xce3   :  { %4395 = vmatprep.subr.bf16.mxu0 %v4720_v29 }
 0xce4   :  { %v4101_v55 = vpop.f32.mrb[50].mxu1 }
 0xce5   :  { %v4102_v56 = vpop.f32.mrb[51].mxu1 }
 0xce6   :  { %v4103_v57 = vadd.f32 %v4102_v56, %v4101_v55 }
 0xce8   :  { %v4396_v58 = vpack.c.bf16 %v4103_v57, %v4100_v54 }
 0xcea   :  { %4397 = vmatpush3.bf16.msra.mxu0 %v4396_v58 }
 0xced   :  { %4358 = vmatmul.mubr.msk.f32.vlgmr.msra.gmra.mrb[60].mxu0 %vm3206_vm15, %v3198_v33 }
 0xdc0   :  { %v3276_v34 = vpop.f32.mrb[60].mxu0 }
 0xdc1   :  { %v3277_v60 = vadd.f32 %v3770_v59, %v3276_v34  ;;  %v4359_v9 = vpop.f32.mrb[61].mxu0 }
 0xdc3   :  { %3280 = vst [vmem:[%s5533_s8] sm:$0xff] %v3277_v60 }
 0xdc4   :  { %3285 = vsyncpa [#allocation3], 1 }
 0xdc5   :  { %3286 = vsyncpa [#allocation5], 1 }

</bundles_post_ra>
